<compile_context>
chip_gen: v7x
topology: tpu7x:2x2x1
jax: 0.10.0
libtpu: 0.0.40
codegen_flags: <defaults>
</compile_context>

<pallas_src>
import functools

import jax
import jax.numpy as jnp
import numpy as np
from jax.experimental import pallas as pl
from jax.experimental.pallas import tpu as pltpu

KSIZE = 7
PAD = KSIZE // 2


def _attention_kernel(H, W, x_ref, w1t_ref, w2_ref, ws1_ref, ws2_ref, masks_ref, o_ref):
    HW = H * W
    x = x_ref[...].astype(jnp.float32)                      # (BB, C, HW) lane-dense
    BB, C, _ = x.shape

    # ---------------- ChannelAttention (VPU + tiny XLU reduces, no MXU) ----------------
    avg_c = jnp.mean(x, axis=2, keepdims=True)              # (BB, C, 1)
    max_c = jnp.max(x, axis=2, keepdims=True)               # (BB, C, 1)
    pooled = jnp.concatenate([avg_c, max_c], axis=2)        # (BB, C, 2)

    w1t = w1t_ref[...].astype(jnp.float32)                  # (C, inter) == fc1.T
    w2 = w2_ref[...].astype(jnp.float32)                    # (C, inter) == fc2
    inter = w1t.shape[1]

    ca = jnp.zeros((BB, C, 1), jnp.float32)
    for i in range(inter):                                  # tiny, statically unrolled
        h = jnp.sum(w1t[None, :, i:i + 1] * pooled, axis=1, keepdims=True)   # (BB, 1, 2)
        h = jnp.maximum(h, 0.0)
        # second layer is linear -> sum the avg/max hidden activations first
        ca = ca + w2[None, :, i:i + 1] * (h[:, :, 0:1] + h[:, :, 1:2])        # (BB, C, 1)
    ch = jax.nn.sigmoid(ca)                                 # (BB, C, 1)

    # ---------------- SpatialAttention ----------------
    # Stack the conv-1 input planes along sublanes: rows 0..BB-1 = per-batch channel mean,
    # rows BB..2BB-1 = per-batch channel max (matches the (2*BB, 49) tap layout).
    mean_rows = [jnp.mean(x[b], axis=0, keepdims=True) for b in range(BB)]    # (1, HW) each
    max_rows = [jnp.max(x[b], axis=0, keepdims=True) for b in range(BB)]
    planes1 = jnp.concatenate(mean_rows + max_rows, axis=0)                   # (2*BB, HW)

    # Precomputed zero-padding border masks (hoisted to the wrapper, passed in as VMEM).
    masks = masks_ref[...]                                  # (2*KSIZE, HW)
    col_mask = [masks[k:k + 1, :] for k in range(KSIZE)]            # valid SOURCE columns
    row_mask = [masks[KSIZE + k:KSIZE + k + 1, :] for k in range(KSIZE)]  # valid OUTPUT rows

    def conv7x7_same(planes, taps):
        """Zero-padded 'same' 7x7 conv on flattened (P, HW) plane stacks.

        Separable roll decomposition:
          h[kx]       = roll(plane * col_mask[kx], -dx)              (6 rolls total)
          row_sum[ky] = sum_kx tap[ky,kx] * h[kx]                    (VPU only)
          out        += row_mask[ky] * roll(row_sum[ky], -dy*W)      (6 rolls total)
        which equals sum_{ky,kx} tap * roll(masked plane, -(dy*W+dx)) * row_mask[ky].
        `taps[t]` is a scalar or a (P, 1)/(1, 1) column broadcast over lanes.
        """
        hshift = []
        for kx in range(KSIZE):
            dx = kx - PAD
            v = planes if dx == 0 else planes * col_mask[kx]
            if dx != 0:
                v = pltpu.roll(v, shift=(-dx) % HW, axis=1)
            hshift.append(v)
        acc = None
        for ky in range(KSIZE):
            dy = ky - PAD
            rs = taps[ky * KSIZE] * hshift[0]
            for kx in range(1, KSIZE):
                rs = rs + taps[ky * KSIZE + kx] * hshift[kx]
            if dy != 0:
                rs = pltpu.roll(rs, shift=(-dy * W) % HW, axis=1) * row_mask[ky]
            acc = rs if acc is None else acc + rs
        return acc

    ws1 = ws1_ref[...].astype(jnp.float32)                  # (2*BB, 49) per-plane taps
    taps1 = [ws1[:, t:t + 1] for t in range(KSIZE * KSIZE)]
    c1 = conv7x7_same(planes1, taps1)                       # (2*BB, HW)
    a1 = jnp.maximum(c1[:BB] + c1[BB:], 0.0)                # sum input channels -> (BB, HW)

    taps2 = [ws2_ref[t] for t in range(KSIZE * KSIZE)]      # SMEM scalars (1 input channel)
    sp = jax.nn.sigmoid(conv7x7_same(a1, taps2))            # (BB, HW)

    # chattn + spattn = ch*x + sp*x = (ch + sp) * x  -> single full-tensor multiply,
    # written per batch row (2-D broadcasting, lane-dense stores).
    for b in range(BB):
        o_ref[b] = ((ch[b] + sp[b:b + 1, :]) * x[b]).astype(o_ref.dtype)


def _num_grid_splits(B):
    """v7x has 2 TensorCores/chip: keep a 2-way 'parallel' batch axis there.
    Single-TC v5e/v6e: collapse the batch grid into one step (grid is a serial loop)."""
    try:
        kind = (jax.devices()[0].device_kind or "").lower()
        n_tc = 2 if ("v7" in kind or "7x" in kind) else 1
    except Exception:  # pragma: no cover - defensive
        n_tc = 1
    return n_tc if (n_tc > 1 and B % n_tc == 0) else 1


def attention_layer(feat, w_fc1, w_fc2, w_sp1, w_sp2):
    """feat: (B, C, H, W); w_fc1: (inter, C); w_fc2: (C, inter);
    w_sp1: (1, 2, 7, 7); w_sp2: (1, 1, 7, 7)  (bias-free Conv2d weights)."""
    B, C, H, W = feat.shape
    HW = H * W
    inter = w_fc1.shape[0]

    G = _num_grid_splits(B)
    BB = B // G

    feat2 = feat.reshape(B, C, HW)                          # lane-dense kernel layout
    w1t = jnp.transpose(w_fc1)                              # (C, inter)
    # conv1 taps per stacked plane: rows 0..BB-1 use the 'mean' channel weights,
    # rows BB..2BB-1 the 'max' channel weights.
    ws1 = jnp.repeat(w_sp1.reshape(2, KSIZE * KSIZE).astype(jnp.float32), BB, axis=0)
    ws2 = w_sp2.reshape(-1).astype(jnp.float32)             # (49,)

    # Precompute zero-padding border masks once (grid-invariant, hoisted out of the kernel).
    pos = np.arange(HW)
    col = pos % W
    cm = np.stack([((col >= max(0, k - PAD)) & (col < min(W, W + (k - PAD))))
                   for k in range(KSIZE)])
    rm = np.stack([((pos >= max(0, -(k - PAD)) * W) & (pos < min(H, H - (k - PAD)) * W))
                   for k in range(KSIZE)])
    masks = jnp.asarray(np.concatenate([cm, rm], axis=0).astype(np.float32))   # (14, HW)

    out2 = pl.pallas_call(
        functools.partial(_attention_kernel, H, W),
        out_shape=jax.ShapeDtypeStruct((B, C, HW), feat.dtype),
        grid=(G,),
        in_specs=[
            pl.BlockSpec((BB, C, HW), lambda b: (b, 0, 0)),
            pl.BlockSpec((C, inter), lambda b: (0, 0)),
            pl.BlockSpec((C, inter), lambda b: (0, 0)),
            pl.BlockSpec((2 * BB, KSIZE * KSIZE), lambda b: (0, 0)),
            pl.BlockSpec(memory_space=pltpu.MemorySpace.SMEM),
            pl.BlockSpec((2 * KSIZE, HW), lambda b: (0, 0)),
        ],
        out_specs=pl.BlockSpec((BB, C, HW), lambda b: (b, 0, 0)),
        compiler_params=pltpu.CompilerParams(
            dimension_semantics=("parallel",)),
    )(feat2, w1t, w_fc2, ws1, ws2, masks)
    return out2.reshape(B, C, H, W)


def _reference(x, w_fc1, w_fc2, w_sp1, w_sp2):
    """Pure-JAX reference matching the PyTorch forward (padding_mode='zeros')."""
    avg = jnp.mean(x, axis=(2, 3))                                   # (B, C)
    mx = jnp.max(x, axis=(2, 3))                                     # (B, C)

    def mlp(v):
        h = jnp.maximum(v @ w_fc1.T, 0.0)
        return h @ w_fc2.T

    ch = jax.nn.sigmoid(mlp(avg) + mlp(mx))[:, :, None, None]

    mean_s = jnp.mean(x, axis=1, keepdims=True)
    max_s = jnp.max(x, axis=1, keepdims=True)
    sp_in = jnp.concatenate([mean_s, max_s], axis=1)                 # (B, 2, H, W)
    conv = lambda inp, w: jax.lax.conv_general_dilated(
        inp, w, window_strides=(1, 1), padding=[(PAD, PAD), (PAD, PAD)],
        dimension_numbers=("NCHW", "OIHW", "NCHW"))
    sp = jax.nn.sigmoid(conv(jnp.maximum(conv(sp_in, w_sp1), 0.0), w_sp2))
    return ch * x + sp * x


if __name__ == "__main__":
    B, C, H, W = 2, 8, 16, 16
    reduction = 4
    inter = max(1, C // reduction)

    key = jax.random.PRNGKey(0)
    k1, k2, k3, k4, k5 = jax.random.split(key, 5)
    feat = jax.random.normal(k1, (B, C, H, W), jnp.float32)
    # Conv2d weights: fc1: C->inter, fc2: inter->C (1x1 convs as matrices).
    w_fc1 = jax.random.normal(k2, (inter, C), jnp.float32) * 0.3
    w_fc2 = jax.random.normal(k3, (C, inter), jnp.float32) * 0.3
    w_sp1 = jax.random.normal(k4, (1, 2, KSIZE, KSIZE), jnp.float32) * 0.1
    w_sp2 = jax.random.normal(k5, (1, 1, KSIZE, KSIZE), jnp.float32) * 0.1

    out = attention_layer(feat, w_fc1, w_fc2, w_sp1, w_sp2)
    out = jax.block_until_ready(out)

    ref = _reference(feat, w_fc1, w_fc2, w_sp1, w_sp2)
    np.testing.assert_allclose(np.asarray(out), np.asarray(ref),
                               rtol=1e-4, atol=1e-4)
    print("KERNEL_OK")
</pallas_src>

<mosaic_0001>
module attributes {stable_mosaic.version = 11 : i64} {
  func.func @_attention_kernel(%arg0: i32, %arg1: memref<2x8x256xf32, #tpu.memory_space<vmem>>, %arg2: memref<8x2xf32, #tpu.memory_space<vmem>>, %arg3: memref<8x2xf32, #tpu.memory_space<vmem>>, %arg4: memref<4x49xf32, #tpu.memory_space<vmem>>, %arg5: memref<49xf32, #tpu.memory_space<smem>>, %arg6: memref<14x256xf32, #tpu.memory_space<vmem>>, %arg7: memref<2x8x256xf32, #tpu.memory_space<vmem>>) attributes {dimension_semantics = [#tpu.dimension_semantics<parallel>], iteration_bounds = array<i64: 1>, scalar_prefetch = 0 : i64, scratch_operands = 0 : i64, tpu.core_type = #tpu.core_type<tc>, window_params = [{transform_indices = @transform_0, window_bounds = array<i64: 2, 8, 256>}, {pipeline_mode = #tpu.pipeline_mode<synchronous>, transform_indices = @transform_1, window_bounds = array<i64: 8, 2>}, {pipeline_mode = #tpu.pipeline_mode<synchronous>, transform_indices = @transform_2, window_bounds = array<i64: 8, 2>}, {pipeline_mode = #tpu.pipeline_mode<synchronous>, transform_indices = @transform_3, window_bounds = array<i64: 4, 49>}, {transform_indices = @transform_4, window_bounds = array<i64: 49>}, {pipeline_mode = #tpu.pipeline_mode<synchronous>, transform_indices = @transform_5, window_bounds = array<i64: 14, 256>}, {transform_indices = @transform_6, window_bounds = array<i64: 2, 8, 256>}]} {
    %c0 = arith.constant 0 : index
    %c0_0 = arith.constant 0 : index
    %c0_1 = arith.constant 0 : index
    %0 = vector.load %arg1[%c0, %c0_0, %c0_1] : memref<2x8x256xf32, #tpu.memory_space<vmem>>, vector<2x8x256xf32>
    %cst = arith.constant dense<0.000000e+00> : vector<2x8xf32>
    %1 = vector.multi_reduction <add>, %0, %cst [2] : vector<2x8x256xf32> to vector<2x8xf32>
    %2 = vector.shape_cast %1 : vector<2x8xf32> to vector<2x8x1xf32>
    %cst_2 = arith.constant 2.560000e+02 : f32
    %3 = vector.broadcast %cst_2 : f32 to vector<2x8x1xf32>
    %4 = arith.divf %2, %3 : vector<2x8x1xf32>
    %cst_3 = arith.constant dense<0xFF800000> : vector<2x8xf32>
    %5 = vector.multi_reduction <maximumf>, %0, %cst_3 [2] : vector<2x8x256xf32> to vector<2x8xf32>
    %6 = vector.shape_cast %5 : vector<2x8xf32> to vector<2x8x1xf32>
    %7 = tpu.concatenate %4, %6 in 2 : vector<2x8x1xf32>, vector<2x8x1xf32> -> vector<2x8x2xf32>
    %c0_4 = arith.constant 0 : index
    %c0_5 = arith.constant 0 : index
    %8 = vector.load %arg2[%c0_4, %c0_5] : memref<8x2xf32, #tpu.memory_space<vmem>>, vector<8x2xf32>
    %c0_6 = arith.constant 0 : index
    %c0_7 = arith.constant 0 : index
    %9 = vector.load %arg3[%c0_6, %c0_7] : memref<8x2xf32, #tpu.memory_space<vmem>>, vector<8x2xf32>
    %cst_8 = arith.constant 0.000000e+00 : f32
    %10 = vector.broadcast %cst_8 : f32 to vector<2x8x1xf32>
    %11 = vector.extract_strided_slice %8 {offsets = [0, 0], sizes = [8, 1], strides = [1, 1]} : vector<8x2xf32> to vector<8x1xf32>
    %12 = vector.shape_cast %11 : vector<8x1xf32> to vector<1x8x1xf32>
    %13 = vector.broadcast %12 : vector<1x8x1xf32> to vector<2x8x2xf32>
    %14 = arith.mulf %13, %7 : vector<2x8x2xf32>
    %cst_9 = arith.constant dense<0.000000e+00> : vector<2x2xf32>
    %15 = vector.multi_reduction <add>, %14, %cst_9 [1] : vector<2x8x2xf32> to vector<2x2xf32>
    %16 = vector.shape_cast %15 : vector<2x2xf32> to vector<2x1x2xf32>
    %cst_10 = arith.constant 0.000000e+00 : f32
    %17 = vector.broadcast %cst_10 : f32 to vector<2x1x2xf32>
    %18 = arith.maximumf %16, %17 : vector<2x1x2xf32>
    %19 = vector.extract_strided_slice %9 {offsets = [0, 0], sizes = [8, 1], strides = [1, 1]} : vector<8x2xf32> to vector<8x1xf32>
    %20 = vector.shape_cast %19 : vector<8x1xf32> to vector<1x8x1xf32>
    %21 = vector.extract_strided_slice %18 {offsets = [0, 0, 0], sizes = [2, 1, 1], strides = [1, 1, 1]} : vector<2x1x2xf32> to vector<2x1x1xf32>
    %22 = vector.extract_strided_slice %18 {offsets = [0, 0, 1], sizes = [2, 1, 1], strides = [1, 1, 1]} : vector<2x1x2xf32> to vector<2x1x1xf32>
    %23 = arith.addf %21, %22 : vector<2x1x1xf32>
    %24 = vector.broadcast %20 : vector<1x8x1xf32> to vector<2x8x1xf32>
    %25 = vector.broadcast %23 : vector<2x1x1xf32> to vector<2x8x1xf32>
    %26 = arith.mulf %24, %25 : vector<2x8x1xf32>
    %27 = arith.addf %10, %26 : vector<2x8x1xf32>
    %28 = vector.extract_strided_slice %8 {offsets = [0, 1], sizes = [8, 1], strides = [1, 1]} : vector<8x2xf32> to vector<8x1xf32>
    %29 = vector.shape_cast %28 : vector<8x1xf32> to vector<1x8x1xf32>
    %30 = vector.broadcast %29 : vector<1x8x1xf32> to vector<2x8x2xf32>
    %31 = arith.mulf %30, %7 : vector<2x8x2xf32>
    %cst_11 = arith.constant dense<0.000000e+00> : vector<2x2xf32>
    %32 = vector.multi_reduction <add>, %31, %cst_11 [1] : vector<2x8x2xf32> to vector<2x2xf32>
    %33 = vector.shape_cast %32 : vector<2x2xf32> to vector<2x1x2xf32>
    %cst_12 = arith.constant 0.000000e+00 : f32
    %34 = vector.broadcast %cst_12 : f32 to vector<2x1x2xf32>
    %35 = arith.maximumf %33, %34 : vector<2x1x2xf32>
    %36 = vector.extract_strided_slice %9 {offsets = [0, 1], sizes = [8, 1], strides = [1, 1]} : vector<8x2xf32> to vector<8x1xf32>
    %37 = vector.shape_cast %36 : vector<8x1xf32> to vector<1x8x1xf32>
    %38 = vector.extract_strided_slice %35 {offsets = [0, 0, 0], sizes = [2, 1, 1], strides = [1, 1, 1]} : vector<2x1x2xf32> to vector<2x1x1xf32>
    %39 = vector.extract_strided_slice %35 {offsets = [0, 0, 1], sizes = [2, 1, 1], strides = [1, 1, 1]} : vector<2x1x2xf32> to vector<2x1x1xf32>
    %40 = arith.addf %38, %39 : vector<2x1x1xf32>
    %41 = vector.broadcast %37 : vector<1x8x1xf32> to vector<2x8x1xf32>
    %42 = vector.broadcast %40 : vector<2x1x1xf32> to vector<2x8x1xf32>
    %43 = arith.mulf %41, %42 : vector<2x8x1xf32>
    %44 = arith.addf %27, %43 : vector<2x8x1xf32>
    %45 = arith.negf %44 : vector<2x8x1xf32>
    %46 = math.exp %45 : vector<2x8x1xf32>
    %cst_13 = arith.constant 1.000000e+00 : f32
    %47 = vector.broadcast %cst_13 : f32 to vector<2x8x1xf32>
    %48 = arith.addf %47, %46 : vector<2x8x1xf32>
    %49 = arith.divf %47, %48 : vector<2x8x1xf32>
    %50 = vector.extract_strided_slice %0 {offsets = [0, 0, 0], sizes = [1, 8, 256], strides = [1, 1, 1]} : vector<2x8x256xf32> to vector<1x8x256xf32>
    %51 = vector.shape_cast %50 : vector<1x8x256xf32> to vector<8x256xf32>
    %cst_14 = arith.constant dense<0.000000e+00> : vector<256xf32>
    %52 = vector.multi_reduction <add>, %51, %cst_14 [0] : vector<8x256xf32> to vector<256xf32>
    %53 = vector.shape_cast %52 : vector<256xf32> to vector<1x256xf32>
    %cst_15 = arith.constant 8.000000e+00 : f32
    %54 = vector.broadcast %cst_15 : f32 to vector<1x256xf32>
    %55 = arith.divf %53, %54 : vector<1x256xf32>
    %56 = vector.extract_strided_slice %0 {offsets = [1, 0, 0], sizes = [1, 8, 256], strides = [1, 1, 1]} : vector<2x8x256xf32> to vector<1x8x256xf32>
    %57 = vector.shape_cast %56 : vector<1x8x256xf32> to vector<8x256xf32>
    %cst_16 = arith.constant dense<0.000000e+00> : vector<256xf32>
    %58 = vector.multi_reduction <add>, %57, %cst_16 [0] : vector<8x256xf32> to vector<256xf32>
    %59 = vector.shape_cast %58 : vector<256xf32> to vector<1x256xf32>
    %cst_17 = arith.constant 8.000000e+00 : f32
    %60 = vector.broadcast %cst_17 : f32 to vector<1x256xf32>
    %61 = arith.divf %59, %60 : vector<1x256xf32>
    %62 = vector.extract_strided_slice %0 {offsets = [0, 0, 0], sizes = [1, 8, 256], strides = [1, 1, 1]} : vector<2x8x256xf32> to vector<1x8x256xf32>
    %63 = vector.shape_cast %62 : vector<1x8x256xf32> to vector<8x256xf32>
    %cst_18 = arith.constant dense<0xFF800000> : vector<256xf32>
    %64 = vector.multi_reduction <maximumf>, %63, %cst_18 [0] : vector<8x256xf32> to vector<256xf32>
    %65 = vector.shape_cast %64 : vector<256xf32> to vector<1x256xf32>
    %66 = vector.extract_strided_slice %0 {offsets = [1, 0, 0], sizes = [1, 8, 256], strides = [1, 1, 1]} : vector<2x8x256xf32> to vector<1x8x256xf32>
    %67 = vector.shape_cast %66 : vector<1x8x256xf32> to vector<8x256xf32>
    %cst_19 = arith.constant dense<0xFF800000> : vector<256xf32>
    %68 = vector.multi_reduction <maximumf>, %67, %cst_19 [0] : vector<8x256xf32> to vector<256xf32>
    %69 = vector.shape_cast %68 : vector<256xf32> to vector<1x256xf32>
    %70 = tpu.concatenate %55, %61, %65, %69 in 0 : vector<1x256xf32>, vector<1x256xf32>, vector<1x256xf32>, vector<1x256xf32> -> vector<4x256xf32>
    %c0_20 = arith.constant 0 : index
    %c0_21 = arith.constant 0 : index
    %71 = vector.load %arg6[%c0_20, %c0_21] : memref<14x256xf32, #tpu.memory_space<vmem>>, vector<14x256xf32>
    %72 = vector.extract_strided_slice %71 {offsets = [0, 0], sizes = [1, 256], strides = [1, 1]} : vector<14x256xf32> to vector<1x256xf32>
    %73 = vector.extract_strided_slice %71 {offsets = [1, 0], sizes = [1, 256], strides = [1, 1]} : vector<14x256xf32> to vector<1x256xf32>
    %74 = vector.extract_strided_slice %71 {offsets = [2, 0], sizes = [1, 256], strides = [1, 1]} : vector<14x256xf32> to vector<1x256xf32>
    %75 = vector.extract_strided_slice %71 {offsets = [4, 0], sizes = [1, 256], strides = [1, 1]} : vector<14x256xf32> to vector<1x256xf32>
    %76 = vector.extract_strided_slice %71 {offsets = [5, 0], sizes = [1, 256], strides = [1, 1]} : vector<14x256xf32> to vector<1x256xf32>
    %77 = vector.extract_strided_slice %71 {offsets = [6, 0], sizes = [1, 256], strides = [1, 1]} : vector<14x256xf32> to vector<1x256xf32>
    %78 = vector.extract_strided_slice %71 {offsets = [7, 0], sizes = [1, 256], strides = [1, 1]} : vector<14x256xf32> to vector<1x256xf32>
    %79 = vector.extract_strided_slice %71 {offsets = [8, 0], sizes = [1, 256], strides = [1, 1]} : vector<14x256xf32> to vector<1x256xf32>
    %80 = vector.extract_strided_slice %71 {offsets = [9, 0], sizes = [1, 256], strides = [1, 1]} : vector<14x256xf32> to vector<1x256xf32>
    %81 = vector.extract_strided_slice %71 {offsets = [11, 0], sizes = [1, 256], strides = [1, 1]} : vector<14x256xf32> to vector<1x256xf32>
    %82 = vector.extract_strided_slice %71 {offsets = [12, 0], sizes = [1, 256], strides = [1, 1]} : vector<14x256xf32> to vector<1x256xf32>
    %83 = vector.extract_strided_slice %71 {offsets = [13, 0], sizes = [1, 256], strides = [1, 1]} : vector<14x256xf32> to vector<1x256xf32>
    %c0_22 = arith.constant 0 : index
    %c0_23 = arith.constant 0 : index
    %84 = vector.load %arg4[%c0_22, %c0_23] : memref<4x49xf32, #tpu.memory_space<vmem>>, vector<4x49xf32>
    %85 = vector.extract_strided_slice %84 {offsets = [0, 0], sizes = [4, 1], strides = [1, 1]} : vector<4x49xf32> to vector<4x1xf32>
    %86 = vector.extract_strided_slice %84 {offsets = [0, 1], sizes = [4, 1], strides = [1, 1]} : vector<4x49xf32> to vector<4x1xf32>
    %87 = vector.extract_strided_slice %84 {offsets = [0, 2], sizes = [4, 1], strides = [1, 1]} : vector<4x49xf32> to vector<4x1xf32>
    %88 = vector.extract_strided_slice %84 {offsets = [0, 3], sizes = [4, 1], strides = [1, 1]} : vector<4x49xf32> to vector<4x1xf32>
    %89 = vector.extract_strided_slice %84 {offsets = [0, 4], sizes = [4, 1], strides = [1, 1]} : vector<4x49xf32> to vector<4x1xf32>
    %90 = vector.extract_strided_slice %84 {offsets = [0, 5], sizes = [4, 1], strides = [1, 1]} : vector<4x49xf32> to vector<4x1xf32>
    %91 = vector.extract_strided_slice %84 {offsets = [0, 6], sizes = [4, 1], strides = [1, 1]} : vector<4x49xf32> to vector<4x1xf32>
    %92 = vector.extract_strided_slice %84 {offsets = [0, 7], sizes = [4, 1], strides = [1, 1]} : vector<4x49xf32> to vector<4x1xf32>
    %93 = vector.extract_strided_slice %84 {offsets = [0, 8], sizes = [4, 1], strides = [1, 1]} : vector<4x49xf32> to vector<4x1xf32>
    %94 = vector.extract_strided_slice %84 {offsets = [0, 9], sizes = [4, 1], strides = [1, 1]} : vector<4x49xf32> to vector<4x1xf32>
    %95 = vector.extract_strided_slice %84 {offsets = [0, 10], sizes = [4, 1], strides = [1, 1]} : vector<4x49xf32> to vector<4x1xf32>
    %96 = vector.extract_strided_slice %84 {offsets = [0, 11], sizes = [4, 1], strides = [1, 1]} : vector<4x49xf32> to vector<4x1xf32>
    %97 = vector.extract_strided_slice %84 {offsets = [0, 12], sizes = [4, 1], strides = [1, 1]} : vector<4x49xf32> to vector<4x1xf32>
    %98 = vector.extract_strided_slice %84 {offsets = [0, 13], sizes = [4, 1], strides = [1, 1]} : vector<4x49xf32> to vector<4x1xf32>
    %99 = vector.extract_strided_slice %84 {offsets = [0, 14], sizes = [4, 1], strides = [1, 1]} : vector<4x49xf32> to vector<4x1xf32>
    %100 = vector.extract_strided_slice %84 {offsets = [0, 15], sizes = [4, 1], strides = [1, 1]} : vector<4x49xf32> to vector<4x1xf32>
    %101 = vector.extract_strided_slice %84 {offsets = [0, 16], sizes = [4, 1], strides = [1, 1]} : vector<4x49xf32> to vector<4x1xf32>
    %102 = vector.extract_strided_slice %84 {offsets = [0, 17], sizes = [4, 1], strides = [1, 1]} : vector<4x49xf32> to vector<4x1xf32>
    %103 = vector.extract_strided_slice %84 {offsets = [0, 18], sizes = [4, 1], strides = [1, 1]} : vector<4x49xf32> to vector<4x1xf32>
    %104 = vector.extract_strided_slice %84 {offsets = [0, 19], sizes = [4, 1], strides = [1, 1]} : vector<4x49xf32> to vector<4x1xf32>
    %105 = vector.extract_strided_slice %84 {offsets = [0, 20], sizes = [4, 1], strides = [1, 1]} : vector<4x49xf32> to vector<4x1xf32>
    %106 = vector.extract_strided_slice %84 {offsets = [0, 21], sizes = [4, 1], strides = [1, 1]} : vector<4x49xf32> to vector<4x1xf32>
    %107 = vector.extract_strided_slice %84 {offsets = [0, 22], sizes = [4, 1], strides = [1, 1]} : vector<4x49xf32> to vector<4x1xf32>
    %108 = vector.extract_strided_slice %84 {offsets = [0, 23], sizes = [4, 1], strides = [1, 1]} : vector<4x49xf32> to vector<4x1xf32>
    %109 = vector.extract_strided_slice %84 {offsets = [0, 24], sizes = [4, 1], strides = [1, 1]} : vector<4x49xf32> to vector<4x1xf32>
    %110 = vector.extract_strided_slice %84 {offsets = [0, 25], sizes = [4, 1], strides = [1, 1]} : vector<4x49xf32> to vector<4x1xf32>
    %111 = vector.extract_strided_slice %84 {offsets = [0, 26], sizes = [4, 1], strides = [1, 1]} : vector<4x49xf32> to vector<4x1xf32>
    %112 = vector.extract_strided_slice %84 {offsets = [0, 27], sizes = [4, 1], strides = [1, 1]} : vector<4x49xf32> to vector<4x1xf32>
    %113 = vector.extract_strided_slice %84 {offsets = [0, 28], sizes = [4, 1], strides = [1, 1]} : vector<4x49xf32> to vector<4x1xf32>
    %114 = vector.extract_strided_slice %84 {offsets = [0, 29], sizes = [4, 1], strides = [1, 1]} : vector<4x49xf32> to vector<4x1xf32>
    %115 = vector.extract_strided_slice %84 {offsets = [0, 30], sizes = [4, 1], strides = [1, 1]} : vector<4x49xf32> to vector<4x1xf32>
    %116 = vector.extract_strided_slice %84 {offsets = [0, 31], sizes = [4, 1], strides = [1, 1]} : vector<4x49xf32> to vector<4x1xf32>
    %117 = vector.extract_strided_slice %84 {offsets = [0, 32], sizes = [4, 1], strides = [1, 1]} : vector<4x49xf32> to vector<4x1xf32>
    %118 = vector.extract_strided_slice %84 {offsets = [0, 33], sizes = [4, 1], strides = [1, 1]} : vector<4x49xf32> to vector<4x1xf32>
    %119 = vector.extract_strided_slice %84 {offsets = [0, 34], sizes = [4, 1], strides = [1, 1]} : vector<4x49xf32> to vector<4x1xf32>
    %120 = vector.extract_strided_slice %84 {offsets = [0, 35], sizes = [4, 1], strides = [1, 1]} : vector<4x49xf32> to vector<4x1xf32>
    %121 = vector.extract_strided_slice %84 {offsets = [0, 36], sizes = [4, 1], strides = [1, 1]} : vector<4x49xf32> to vector<4x1xf32>
    %122 = vector.extract_strided_slice %84 {offsets = [0, 37], sizes = [4, 1], strides = [1, 1]} : vector<4x49xf32> to vector<4x1xf32>
    %123 = vector.extract_strided_slice %84 {offsets = [0, 38], sizes = [4, 1], strides = [1, 1]} : vector<4x49xf32> to vector<4x1xf32>
    %124 = vector.extract_strided_slice %84 {offsets = [0, 39], sizes = [4, 1], strides = [1, 1]} : vector<4x49xf32> to vector<4x1xf32>
    %125 = vector.extract_strided_slice %84 {offsets = [0, 40], sizes = [4, 1], strides = [1, 1]} : vector<4x49xf32> to vector<4x1xf32>
    %126 = vector.extract_strided_slice %84 {offsets = [0, 41], sizes = [4, 1], strides = [1, 1]} : vector<4x49xf32> to vector<4x1xf32>
    %127 = vector.extract_strided_slice %84 {offsets = [0, 42], sizes = [4, 1], strides = [1, 1]} : vector<4x49xf32> to vector<4x1xf32>
    %128 = vector.extract_strided_slice %84 {offsets = [0, 43], sizes = [4, 1], strides = [1, 1]} : vector<4x49xf32> to vector<4x1xf32>
    %129 = vector.extract_strided_slice %84 {offsets = [0, 44], sizes = [4, 1], strides = [1, 1]} : vector<4x49xf32> to vector<4x1xf32>
    %130 = vector.extract_strided_slice %84 {offsets = [0, 45], sizes = [4, 1], strides = [1, 1]} : vector<4x49xf32> to vector<4x1xf32>
    %131 = vector.extract_strided_slice %84 {offsets = [0, 46], sizes = [4, 1], strides = [1, 1]} : vector<4x49xf32> to vector<4x1xf32>
    %132 = vector.extract_strided_slice %84 {offsets = [0, 47], sizes = [4, 1], strides = [1, 1]} : vector<4x49xf32> to vector<4x1xf32>
    %133 = vector.extract_strided_slice %84 {offsets = [0, 48], sizes = [4, 1], strides = [1, 1]} : vector<4x49xf32> to vector<4x1xf32>
    %134 = vector.broadcast %72 : vector<1x256xf32> to vector<4x256xf32>
    %135 = arith.mulf %70, %134 : vector<4x256xf32>
    %c3_i32 = arith.constant 3 : i32
    %136 = tpu.dynamic_rotate %135 by %c3_i32 dim 1 : vector<4x256xf32>, i32 -> vector<4x256xf32>
    %137 = vector.broadcast %73 : vector<1x256xf32> to vector<4x256xf32>
    %138 = arith.mulf %70, %137 : vector<4x256xf32>
    %c2_i32 = arith.constant 2 : i32
    %139 = tpu.dynamic_rotate %138 by %c2_i32 dim 1 : vector<4x256xf32>, i32 -> vector<4x256xf32>
    %140 = vector.broadcast %74 : vector<1x256xf32> to vector<4x256xf32>
    %141 = arith.mulf %70, %140 : vector<4x256xf32>
    %c1_i32 = arith.constant 1 : i32
    %142 = tpu.dynamic_rotate %141 by %c1_i32 dim 1 : vector<4x256xf32>, i32 -> vector<4x256xf32>
    %143 = vector.broadcast %75 : vector<1x256xf32> to vector<4x256xf32>
    %144 = arith.mulf %70, %143 : vector<4x256xf32>
    %c255_i32 = arith.constant 255 : i32
    %145 = tpu.dynamic_rotate %144 by %c255_i32 dim 1 : vector<4x256xf32>, i32 -> vector<4x256xf32>
    %146 = vector.broadcast %76 : vector<1x256xf32> to vector<4x256xf32>
    %147 = arith.mulf %70, %146 : vector<4x256xf32>
    %c254_i32 = arith.constant 254 : i32
    %148 = tpu.dynamic_rotate %147 by %c254_i32 dim 1 : vector<4x256xf32>, i32 -> vector<4x256xf32>
    %149 = vector.broadcast %77 : vector<1x256xf32> to vector<4x256xf32>
    %150 = arith.mulf %70, %149 : vector<4x256xf32>
    %c253_i32 = arith.constant 253 : i32
    %151 = tpu.dynamic_rotate %150 by %c253_i32 dim 1 : vector<4x256xf32>, i32 -> vector<4x256xf32>
    %152 = vector.broadcast %85 : vector<4x1xf32> to vector<4x256xf32>
    %153 = arith.mulf %152, %136 : vector<4x256xf32>
    %154 = vector.broadcast %86 : vector<4x1xf32> to vector<4x256xf32>
    %155 = arith.mulf %154, %139 : vector<4x256xf32>
    %156 = arith.addf %153, %155 : vector<4x256xf32>
    %157 = vector.broadcast %87 : vector<4x1xf32> to vector<4x256xf32>
    %158 = arith.mulf %157, %142 : vector<4x256xf32>
    %159 = arith.addf %156, %158 : vector<4x256xf32>
    %160 = vector.broadcast %88 : vector<4x1xf32> to vector<4x256xf32>
    %161 = arith.mulf %160, %70 : vector<4x256xf32>
    %162 = arith.addf %159, %161 : vector<4x256xf32>
    %163 = vector.broadcast %89 : vector<4x1xf32> to vector<4x256xf32>
    %164 = arith.mulf %163, %145 : vector<4x256xf32>
    %165 = arith.addf %162, %164 : vector<4x256xf32>
    %166 = vector.broadcast %90 : vector<4x1xf32> to vector<4x256xf32>
    %167 = arith.mulf %166, %148 : vector<4x256xf32>
    %168 = arith.addf %165, %167 : vector<4x256xf32>
    %169 = vector.broadcast %91 : vector<4x1xf32> to vector<4x256xf32>
    %170 = arith.mulf %169, %151 : vector<4x256xf32>
    %171 = arith.addf %168, %170 : vector<4x256xf32>
    %c48_i32 = arith.constant 48 : i32
    %172 = tpu.dynamic_rotate %171 by %c48_i32 dim 1 : vector<4x256xf32>, i32 -> vector<4x256xf32>
    %173 = vector.broadcast %78 : vector<1x256xf32> to vector<4x256xf32>
    %174 = arith.mulf %172, %173 : vector<4x256xf32>
    %175 = vector.broadcast %92 : vector<4x1xf32> to vector<4x256xf32>
    %176 = arith.mulf %175, %136 : vector<4x256xf32>
    %177 = vector.broadcast %93 : vector<4x1xf32> to vector<4x256xf32>
    %178 = arith.mulf %177, %139 : vector<4x256xf32>
    %179 = arith.addf %176, %178 : vector<4x256xf32>
    %180 = vector.broadcast %94 : vector<4x1xf32> to vector<4x256xf32>
    %181 = arith.mulf %180, %142 : vector<4x256xf32>
    %182 = arith.addf %179, %181 : vector<4x256xf32>
    %183 = vector.broadcast %95 : vector<4x1xf32> to vector<4x256xf32>
    %184 = arith.mulf %183, %70 : vector<4x256xf32>
    %185 = arith.addf %182, %184 : vector<4x256xf32>
    %186 = vector.broadcast %96 : vector<4x1xf32> to vector<4x256xf32>
    %187 = arith.mulf %186, %145 : vector<4x256xf32>
    %188 = arith.addf %185, %187 : vector<4x256xf32>
    %189 = vector.broadcast %97 : vector<4x1xf32> to vector<4x256xf32>
    %190 = arith.mulf %189, %148 : vector<4x256xf32>
    %191 = arith.addf %188, %190 : vector<4x256xf32>
    %192 = vector.broadcast %98 : vector<4x1xf32> to vector<4x256xf32>
    %193 = arith.mulf %192, %151 : vector<4x256xf32>
    %194 = arith.addf %191, %193 : vector<4x256xf32>
    %c32_i32 = arith.constant 32 : i32
    %195 = tpu.dynamic_rotate %194 by %c32_i32 dim 1 : vector<4x256xf32>, i32 -> vector<4x256xf32>
    %196 = vector.broadcast %79 : vector<1x256xf32> to vector<4x256xf32>
    %197 = arith.mulf %195, %196 : vector<4x256xf32>
    %198 = arith.addf %174, %197 : vector<4x256xf32>
    %199 = vector.broadcast %99 : vector<4x1xf32> to vector<4x256xf32>
    %200 = arith.mulf %199, %136 : vector<4x256xf32>
    %201 = vector.broadcast %100 : vector<4x1xf32> to vector<4x256xf32>
    %202 = arith.mulf %201, %139 : vector<4x256xf32>
    %203 = arith.addf %200, %202 : vector<4x256xf32>
    %204 = vector.broadcast %101 : vector<4x1xf32> to vector<4x256xf32>
    %205 = arith.mulf %204, %142 : vector<4x256xf32>
    %206 = arith.addf %203, %205 : vector<4x256xf32>
    %207 = vector.broadcast %102 : vector<4x1xf32> to vector<4x256xf32>
    %208 = arith.mulf %207, %70 : vector<4x256xf32>
    %209 = arith.addf %206, %208 : vector<4x256xf32>
    %210 = vector.broadcast %103 : vector<4x1xf32> to vector<4x256xf32>
    %211 = arith.mulf %210, %145 : vector<4x256xf32>
    %212 = arith.addf %209, %211 : vector<4x256xf32>
    %213 = vector.broadcast %104 : vector<4x1xf32> to vector<4x256xf32>
    %214 = arith.mulf %213, %148 : vector<4x256xf32>
    %215 = arith.addf %212, %214 : vector<4x256xf32>
    %216 = vector.broadcast %105 : vector<4x1xf32> to vector<4x256xf32>
    %217 = arith.mulf %216, %151 : vector<4x256xf32>
    %218 = arith.addf %215, %217 : vector<4x256xf32>
    %c16_i32 = arith.constant 16 : i32
    %219 = tpu.dynamic_rotate %218 by %c16_i32 dim 1 : vector<4x256xf32>, i32 -> vector<4x256xf32>
    %220 = vector.broadcast %80 : vector<1x256xf32> to vector<4x256xf32>
    %221 = arith.mulf %219, %220 : vector<4x256xf32>
    %222 = arith.addf %198, %221 : vector<4x256xf32>
    %223 = vector.broadcast %106 : vector<4x1xf32> to vector<4x256xf32>
    %224 = arith.mulf %223, %136 : vector<4x256xf32>
    %225 = vector.broadcast %107 : vector<4x1xf32> to vector<4x256xf32>
    %226 = arith.mulf %225, %139 : vector<4x256xf32>
    %227 = arith.addf %224, %226 : vector<4x256xf32>
    %228 = vector.broadcast %108 : vector<4x1xf32> to vector<4x256xf32>
    %229 = arith.mulf %228, %142 : vector<4x256xf32>
    %230 = arith.addf %227, %229 : vector<4x256xf32>
    %231 = vector.broadcast %109 : vector<4x1xf32> to vector<4x256xf32>
    %232 = arith.mulf %231, %70 : vector<4x256xf32>
    %233 = arith.addf %230, %232 : vector<4x256xf32>
    %234 = vector.broadcast %110 : vector<4x1xf32> to vector<4x256xf32>
    %235 = arith.mulf %234, %145 : vector<4x256xf32>
    %236 = arith.addf %233, %235 : vector<4x256xf32>
    %237 = vector.broadcast %111 : vector<4x1xf32> to vector<4x256xf32>
    %238 = arith.mulf %237, %148 : vector<4x256xf32>
    %239 = arith.addf %236, %238 : vector<4x256xf32>
    %240 = vector.broadcast %112 : vector<4x1xf32> to vector<4x256xf32>
    %241 = arith.mulf %240, %151 : vector<4x256xf32>
    %242 = arith.addf %239, %241 : vector<4x256xf32>
    %243 = arith.addf %222, %242 : vector<4x256xf32>
    %244 = vector.broadcast %113 : vector<4x1xf32> to vector<4x256xf32>
    %245 = arith.mulf %244, %136 : vector<4x256xf32>
    %246 = vector.broadcast %114 : vector<4x1xf32> to vector<4x256xf32>
    %247 = arith.mulf %246, %139 : vector<4x256xf32>
    %248 = arith.addf %245, %247 : vector<4x256xf32>
    %249 = vector.broadcast %115 : vector<4x1xf32> to vector<4x256xf32>
    %250 = arith.mulf %249, %142 : vector<4x256xf32>
    %251 = arith.addf %248, %250 : vector<4x256xf32>
    %252 = vector.broadcast %116 : vector<4x1xf32> to vector<4x256xf32>
    %253 = arith.mulf %252, %70 : vector<4x256xf32>
    %254 = arith.addf %251, %253 : vector<4x256xf32>
    %255 = vector.broadcast %117 : vector<4x1xf32> to vector<4x256xf32>
    %256 = arith.mulf %255, %145 : vector<4x256xf32>
    %257 = arith.addf %254, %256 : vector<4x256xf32>
    %258 = vector.broadcast %118 : vector<4x1xf32> to vector<4x256xf32>
    %259 = arith.mulf %258, %148 : vector<4x256xf32>
    %260 = arith.addf %257, %259 : vector<4x256xf32>
    %261 = vector.broadcast %119 : vector<4x1xf32> to vector<4x256xf32>
    %262 = arith.mulf %261, %151 : vector<4x256xf32>
    %263 = arith.addf %260, %262 : vector<4x256xf32>
    %c240_i32 = arith.constant 240 : i32
    %264 = tpu.dynamic_rotate %263 by %c240_i32 dim 1 : vector<4x256xf32>, i32 -> vector<4x256xf32>
    %265 = vector.broadcast %81 : vector<1x256xf32> to vector<4x256xf32>
    %266 = arith.mulf %264, %265 : vector<4x256xf32>
    %267 = arith.addf %243, %266 : vector<4x256xf32>
    %268 = vector.broadcast %120 : vector<4x1xf32> to vector<4x256xf32>
    %269 = arith.mulf %268, %136 : vector<4x256xf32>
    %270 = vector.broadcast %121 : vector<4x1xf32> to vector<4x256xf32>
    %271 = arith.mulf %270, %139 : vector<4x256xf32>
    %272 = arith.addf %269, %271 : vector<4x256xf32>
    %273 = vector.broadcast %122 : vector<4x1xf32> to vector<4x256xf32>
    %274 = arith.mulf %273, %142 : vector<4x256xf32>
    %275 = arith.addf %272, %274 : vector<4x256xf32>
    %276 = vector.broadcast %123 : vector<4x1xf32> to vector<4x256xf32>
    %277 = arith.mulf %276, %70 : vector<4x256xf32>
    %278 = arith.addf %275, %277 : vector<4x256xf32>
    %279 = vector.broadcast %124 : vector<4x1xf32> to vector<4x256xf32>
    %280 = arith.mulf %279, %145 : vector<4x256xf32>
    %281 = arith.addf %278, %280 : vector<4x256xf32>
    %282 = vector.broadcast %125 : vector<4x1xf32> to vector<4x256xf32>
    %283 = arith.mulf %282, %148 : vector<4x256xf32>
    %284 = arith.addf %281, %283 : vector<4x256xf32>
    %285 = vector.broadcast %126 : vector<4x1xf32> to vector<4x256xf32>
    %286 = arith.mulf %285, %151 : vector<4x256xf32>
    %287 = arith.addf %284, %286 : vector<4x256xf32>
    %c224_i32 = arith.constant 224 : i32
    %288 = tpu.dynamic_rotate %287 by %c224_i32 dim 1 : vector<4x256xf32>, i32 -> vector<4x256xf32>
    %289 = vector.broadcast %82 : vector<1x256xf32> to vector<4x256xf32>
    %290 = arith.mulf %288, %289 : vector<4x256xf32>
    %291 = arith.addf %267, %290 : vector<4x256xf32>
    %292 = vector.broadcast %127 : vector<4x1xf32> to vector<4x256xf32>
    %293 = arith.mulf %292, %136 : vector<4x256xf32>
    %294 = vector.broadcast %128 : vector<4x1xf32> to vector<4x256xf32>
    %295 = arith.mulf %294, %139 : vector<4x256xf32>
    %296 = arith.addf %293, %295 : vector<4x256xf32>
    %297 = vector.broadcast %129 : vector<4x1xf32> to vector<4x256xf32>
    %298 = arith.mulf %297, %142 : vector<4x256xf32>
    %299 = arith.addf %296, %298 : vector<4x256xf32>
    %300 = vector.broadcast %130 : vector<4x1xf32> to vector<4x256xf32>
    %301 = arith.mulf %300, %70 : vector<4x256xf32>
    %302 = arith.addf %299, %301 : vector<4x256xf32>
    %303 = vector.broadcast %131 : vector<4x1xf32> to vector<4x256xf32>
    %304 = arith.mulf %303, %145 : vector<4x256xf32>
    %305 = arith.addf %302, %304 : vector<4x256xf32>
    %306 = vector.broadcast %132 : vector<4x1xf32> to vector<4x256xf32>
    %307 = arith.mulf %306, %148 : vector<4x256xf32>
    %308 = arith.addf %305, %307 : vector<4x256xf32>
    %309 = vector.broadcast %133 : vector<4x1xf32> to vector<4x256xf32>
    %310 = arith.mulf %309, %151 : vector<4x256xf32>
    %311 = arith.addf %308, %310 : vector<4x256xf32>
    %c208_i32 = arith.constant 208 : i32
    %312 = tpu.dynamic_rotate %311 by %c208_i32 dim 1 : vector<4x256xf32>, i32 -> vector<4x256xf32>
    %313 = vector.broadcast %83 : vector<1x256xf32> to vector<4x256xf32>
    %314 = arith.mulf %312, %313 : vector<4x256xf32>
    %315 = arith.addf %291, %314 : vector<4x256xf32>
    %316 = vector.extract_strided_slice %315 {offsets = [0, 0], sizes = [2, 256], strides = [1, 1]} : vector<4x256xf32> to vector<2x256xf32>
    %317 = vector.extract_strided_slice %315 {offsets = [2, 0], sizes = [2, 256], strides = [1, 1]} : vector<4x256xf32> to vector<2x256xf32>
    %318 = arith.addf %316, %317 : vector<2x256xf32>
    %cst_24 = arith.constant 0.000000e+00 : f32
    %319 = vector.broadcast %cst_24 : f32 to vector<2x256xf32>
    %320 = arith.maximumf %318, %319 : vector<2x256xf32>
    %c0_25 = arith.constant 0 : index
    %321 = memref.load %arg5[%c0_25] : memref<49xf32, #tpu.memory_space<smem>>
    %c1 = arith.constant 1 : index
    %322 = memref.load %arg5[%c1] : memref<49xf32, #tpu.memory_space<smem>>
    %c2 = arith.constant 2 : index
    %323 = memref.load %arg5[%c2] : memref<49xf32, #tpu.memory_space<smem>>
    %c3 = arith.constant 3 : index
    %324 = memref.load %arg5[%c3] : memref<49xf32, #tpu.memory_space<smem>>
    %c4 = arith.constant 4 : index
    %325 = memref.load %arg5[%c4] : memref<49xf32, #tpu.memory_space<smem>>
    %c5 = arith.constant 5 : index
    %326 = memref.load %arg5[%c5] : memref<49xf32, #tpu.memory_space<smem>>
    %c6 = arith.constant 6 : index
    %327 = memref.load %arg5[%c6] : memref<49xf32, #tpu.memory_space<smem>>
    %c7 = arith.constant 7 : index
    %328 = memref.load %arg5[%c7] : memref<49xf32, #tpu.memory_space<smem>>
    %c8 = arith.constant 8 : index
    %329 = memref.load %arg5[%c8] : memref<49xf32, #tpu.memory_space<smem>>
    %c9 = arith.constant 9 : index
    %330 = memref.load %arg5[%c9] : memref<49xf32, #tpu.memory_space<smem>>
    %c10 = arith.constant 10 : index
    %331 = memref.load %arg5[%c10] : memref<49xf32, #tpu.memory_space<smem>>
    %c11 = arith.constant 11 : index
    %332 = memref.load %arg5[%c11] : memref<49xf32, #tpu.memory_space<smem>>
    %c12 = arith.constant 12 : index
    %333 = memref.load %arg5[%c12] : memref<49xf32, #tpu.memory_space<smem>>
    %c13 = arith.constant 13 : index
    %334 = memref.load %arg5[%c13] : memref<49xf32, #tpu.memory_space<smem>>
    %c14 = arith.constant 14 : index
    %335 = memref.load %arg5[%c14] : memref<49xf32, #tpu.memory_space<smem>>
    %c15 = arith.constant 15 : index
    %336 = memref.load %arg5[%c15] : memref<49xf32, #tpu.memory_space<smem>>
    %c16 = arith.constant 16 : index
    %337 = memref.load %arg5[%c16] : memref<49xf32, #tpu.memory_space<smem>>
    %c17 = arith.constant 17 : index
    %338 = memref.load %arg5[%c17] : memref<49xf32, #tpu.memory_space<smem>>
    %c18 = arith.constant 18 : index
    %339 = memref.load %arg5[%c18] : memref<49xf32, #tpu.memory_space<smem>>
    %c19 = arith.constant 19 : index
    %340 = memref.load %arg5[%c19] : memref<49xf32, #tpu.memory_space<smem>>
    %c20 = arith.constant 20 : index
    %341 = memref.load %arg5[%c20] : memref<49xf32, #tpu.memory_space<smem>>
    %c21 = arith.constant 21 : index
    %342 = memref.load %arg5[%c21] : memref<49xf32, #tpu.memory_space<smem>>
    %c22 = arith.constant 22 : index
    %343 = memref.load %arg5[%c22] : memref<49xf32, #tpu.memory_space<smem>>
    %c23 = arith.constant 23 : index
    %344 = memref.load %arg5[%c23] : memref<49xf32, #tpu.memory_space<smem>>
    %c24 = arith.constant 24 : index
    %345 = memref.load %arg5[%c24] : memref<49xf32, #tpu.memory_space<smem>>
    %c25 = arith.constant 25 : index
    %346 = memref.load %arg5[%c25] : memref<49xf32, #tpu.memory_space<smem>>
    %c26 = arith.constant 26 : index
    %347 = memref.load %arg5[%c26] : memref<49xf32, #tpu.memory_space<smem>>
    %c27 = arith.constant 27 : index
    %348 = memref.load %arg5[%c27] : memref<49xf32, #tpu.memory_space<smem>>
    %c28 = arith.constant 28 : index
    %349 = memref.load %arg5[%c28] : memref<49xf32, #tpu.memory_space<smem>>
    %c29 = arith.constant 29 : index
    %350 = memref.load %arg5[%c29] : memref<49xf32, #tpu.memory_space<smem>>
    %c30 = arith.constant 30 : index
    %351 = memref.load %arg5[%c30] : memref<49xf32, #tpu.memory_space<smem>>
    %c31 = arith.constant 31 : index
    %352 = memref.load %arg5[%c31] : memref<49xf32, #tpu.memory_space<smem>>
    %c32 = arith.constant 32 : index
    %353 = memref.load %arg5[%c32] : memref<49xf32, #tpu.memory_space<smem>>
    %c33 = arith.constant 33 : index
    %354 = memref.load %arg5[%c33] : memref<49xf32, #tpu.memory_space<smem>>
    %c34 = arith.constant 34 : index
    %355 = memref.load %arg5[%c34] : memref<49xf32, #tpu.memory_space<smem>>
    %c35 = arith.constant 35 : index
    %356 = memref.load %arg5[%c35] : memref<49xf32, #tpu.memory_space<smem>>
    %c36 = arith.constant 36 : index
    %357 = memref.load %arg5[%c36] : memref<49xf32, #tpu.memory_space<smem>>
    %c37 = arith.constant 37 : index
    %358 = memref.load %arg5[%c37] : memref<49xf32, #tpu.memory_space<smem>>
    %c38 = arith.constant 38 : index
    %359 = memref.load %arg5[%c38] : memref<49xf32, #tpu.memory_space<smem>>
    %c39 = arith.constant 39 : index
    %360 = memref.load %arg5[%c39] : memref<49xf32, #tpu.memory_space<smem>>
    %c40 = arith.constant 40 : index
    %361 = memref.load %arg5[%c40] : memref<49xf32, #tpu.memory_space<smem>>
    %c41 = arith.constant 41 : index
    %362 = memref.load %arg5[%c41] : memref<49xf32, #tpu.memory_space<smem>>
    %c42 = arith.constant 42 : index
    %363 = memref.load %arg5[%c42] : memref<49xf32, #tpu.memory_space<smem>>
    %c43 = arith.constant 43 : index
    %364 = memref.load %arg5[%c43] : memref<49xf32, #tpu.memory_space<smem>>
    %c44 = arith.constant 44 : index
    %365 = memref.load %arg5[%c44] : memref<49xf32, #tpu.memory_space<smem>>
    %c45 = arith.constant 45 : index
    %366 = memref.load %arg5[%c45] : memref<49xf32, #tpu.memory_space<smem>>
    %c46 = arith.constant 46 : index
    %367 = memref.load %arg5[%c46] : memref<49xf32, #tpu.memory_space<smem>>
    %c47 = arith.constant 47 : index
    %368 = memref.load %arg5[%c47] : memref<49xf32, #tpu.memory_space<smem>>
    %c48 = arith.constant 48 : index
    %369 = memref.load %arg5[%c48] : memref<49xf32, #tpu.memory_space<smem>>
    %370 = vector.broadcast %72 : vector<1x256xf32> to vector<2x256xf32>
    %371 = arith.mulf %320, %370 : vector<2x256xf32>
    %c3_i32_26 = arith.constant 3 : i32
    %372 = tpu.dynamic_rotate %371 by %c3_i32_26 dim 1 : vector<2x256xf32>, i32 -> vector<2x256xf32>
    %373 = vector.broadcast %73 : vector<1x256xf32> to vector<2x256xf32>
    %374 = arith.mulf %320, %373 : vector<2x256xf32>
    %c2_i32_27 = arith.constant 2 : i32
    %375 = tpu.dynamic_rotate %374 by %c2_i32_27 dim 1 : vector<2x256xf32>, i32 -> vector<2x256xf32>
    %376 = vector.broadcast %74 : vector<1x256xf32> to vector<2x256xf32>
    %377 = arith.mulf %320, %376 : vector<2x256xf32>
    %c1_i32_28 = arith.constant 1 : i32
    %378 = tpu.dynamic_rotate %377 by %c1_i32_28 dim 1 : vector<2x256xf32>, i32 -> vector<2x256xf32>
    %379 = vector.broadcast %75 : vector<1x256xf32> to vector<2x256xf32>
    %380 = arith.mulf %320, %379 : vector<2x256xf32>
    %c255_i32_29 = arith.constant 255 : i32
    %381 = tpu.dynamic_rotate %380 by %c255_i32_29 dim 1 : vector<2x256xf32>, i32 -> vector<2x256xf32>
    %382 = vector.broadcast %76 : vector<1x256xf32> to vector<2x256xf32>
    %383 = arith.mulf %320, %382 : vector<2x256xf32>
    %c254_i32_30 = arith.constant 254 : i32
    %384 = tpu.dynamic_rotate %383 by %c254_i32_30 dim 1 : vector<2x256xf32>, i32 -> vector<2x256xf32>
    %385 = vector.broadcast %77 : vector<1x256xf32> to vector<2x256xf32>
    %386 = arith.mulf %320, %385 : vector<2x256xf32>
    %c253_i32_31 = arith.constant 253 : i32
    %387 = tpu.dynamic_rotate %386 by %c253_i32_31 dim 1 : vector<2x256xf32>, i32 -> vector<2x256xf32>
    %388 = vector.broadcast %321 : f32 to vector<2x256xf32>
    %389 = arith.mulf %388, %372 : vector<2x256xf32>
    %390 = vector.broadcast %322 : f32 to vector<2x256xf32>
    %391 = arith.mulf %390, %375 : vector<2x256xf32>
    %392 = arith.addf %389, %391 : vector<2x256xf32>
    %393 = vector.broadcast %323 : f32 to vector<2x256xf32>
    %394 = arith.mulf %393, %378 : vector<2x256xf32>
    %395 = arith.addf %392, %394 : vector<2x256xf32>
    %396 = vector.broadcast %324 : f32 to vector<2x256xf32>
    %397 = arith.mulf %396, %320 : vector<2x256xf32>
    %398 = arith.addf %395, %397 : vector<2x256xf32>
    %399 = vector.broadcast %325 : f32 to vector<2x256xf32>
    %400 = arith.mulf %399, %381 : vector<2x256xf32>
    %401 = arith.addf %398, %400 : vector<2x256xf32>
    %402 = vector.broadcast %326 : f32 to vector<2x256xf32>
    %403 = arith.mulf %402, %384 : vector<2x256xf32>
    %404 = arith.addf %401, %403 : vector<2x256xf32>
    %405 = vector.broadcast %327 : f32 to vector<2x256xf32>
    %406 = arith.mulf %405, %387 : vector<2x256xf32>
    %407 = arith.addf %404, %406 : vector<2x256xf32>
    %c48_i32_32 = arith.constant 48 : i32
    %408 = tpu.dynamic_rotate %407 by %c48_i32_32 dim 1 : vector<2x256xf32>, i32 -> vector<2x256xf32>
    %409 = vector.broadcast %78 : vector<1x256xf32> to vector<2x256xf32>
    %410 = arith.mulf %408, %409 : vector<2x256xf32>
    %411 = vector.broadcast %328 : f32 to vector<2x256xf32>
    %412 = arith.mulf %411, %372 : vector<2x256xf32>
    %413 = vector.broadcast %329 : f32 to vector<2x256xf32>
    %414 = arith.mulf %413, %375 : vector<2x256xf32>
    %415 = arith.addf %412, %414 : vector<2x256xf32>
    %416 = vector.broadcast %330 : f32 to vector<2x256xf32>
    %417 = arith.mulf %416, %378 : vector<2x256xf32>
    %418 = arith.addf %415, %417 : vector<2x256xf32>
    %419 = vector.broadcast %331 : f32 to vector<2x256xf32>
    %420 = arith.mulf %419, %320 : vector<2x256xf32>
    %421 = arith.addf %418, %420 : vector<2x256xf32>
    %422 = vector.broadcast %332 : f32 to vector<2x256xf32>
    %423 = arith.mulf %422, %381 : vector<2x256xf32>
    %424 = arith.addf %421, %423 : vector<2x256xf32>
    %425 = vector.broadcast %333 : f32 to vector<2x256xf32>
    %426 = arith.mulf %425, %384 : vector<2x256xf32>
    %427 = arith.addf %424, %426 : vector<2x256xf32>
    %428 = vector.broadcast %334 : f32 to vector<2x256xf32>
    %429 = arith.mulf %428, %387 : vector<2x256xf32>
    %430 = arith.addf %427, %429 : vector<2x256xf32>
    %c32_i32_33 = arith.constant 32 : i32
    %431 = tpu.dynamic_rotate %430 by %c32_i32_33 dim 1 : vector<2x256xf32>, i32 -> vector<2x256xf32>
    %432 = vector.broadcast %79 : vector<1x256xf32> to vector<2x256xf32>
    %433 = arith.mulf %431, %432 : vector<2x256xf32>
    %434 = arith.addf %410, %433 : vector<2x256xf32>
    %435 = vector.broadcast %335 : f32 to vector<2x256xf32>
    %436 = arith.mulf %435, %372 : vector<2x256xf32>
    %437 = vector.broadcast %336 : f32 to vector<2x256xf32>
    %438 = arith.mulf %437, %375 : vector<2x256xf32>
    %439 = arith.addf %436, %438 : vector<2x256xf32>
    %440 = vector.broadcast %337 : f32 to vector<2x256xf32>
    %441 = arith.mulf %440, %378 : vector<2x256xf32>
    %442 = arith.addf %439, %441 : vector<2x256xf32>
    %443 = vector.broadcast %338 : f32 to vector<2x256xf32>
    %444 = arith.mulf %443, %320 : vector<2x256xf32>
    %445 = arith.addf %442, %444 : vector<2x256xf32>
    %446 = vector.broadcast %339 : f32 to vector<2x256xf32>
    %447 = arith.mulf %446, %381 : vector<2x256xf32>
    %448 = arith.addf %445, %447 : vector<2x256xf32>
    %449 = vector.broadcast %340 : f32 to vector<2x256xf32>
    %450 = arith.mulf %449, %384 : vector<2x256xf32>
    %451 = arith.addf %448, %450 : vector<2x256xf32>
    %452 = vector.broadcast %341 : f32 to vector<2x256xf32>
    %453 = arith.mulf %452, %387 : vector<2x256xf32>
    %454 = arith.addf %451, %453 : vector<2x256xf32>
    %c16_i32_34 = arith.constant 16 : i32
    %455 = tpu.dynamic_rotate %454 by %c16_i32_34 dim 1 : vector<2x256xf32>, i32 -> vector<2x256xf32>
    %456 = vector.broadcast %80 : vector<1x256xf32> to vector<2x256xf32>
    %457 = arith.mulf %455, %456 : vector<2x256xf32>
    %458 = arith.addf %434, %457 : vector<2x256xf32>
    %459 = vector.broadcast %342 : f32 to vector<2x256xf32>
    %460 = arith.mulf %459, %372 : vector<2x256xf32>
    %461 = vector.broadcast %343 : f32 to vector<2x256xf32>
    %462 = arith.mulf %461, %375 : vector<2x256xf32>
    %463 = arith.addf %460, %462 : vector<2x256xf32>
    %464 = vector.broadcast %344 : f32 to vector<2x256xf32>
    %465 = arith.mulf %464, %378 : vector<2x256xf32>
    %466 = arith.addf %463, %465 : vector<2x256xf32>
    %467 = vector.broadcast %345 : f32 to vector<2x256xf32>
    %468 = arith.mulf %467, %320 : vector<2x256xf32>
    %469 = arith.addf %466, %468 : vector<2x256xf32>
    %470 = vector.broadcast %346 : f32 to vector<2x256xf32>
    %471 = arith.mulf %470, %381 : vector<2x256xf32>
    %472 = arith.addf %469, %471 : vector<2x256xf32>
    %473 = vector.broadcast %347 : f32 to vector<2x256xf32>
    %474 = arith.mulf %473, %384 : vector<2x256xf32>
    %475 = arith.addf %472, %474 : vector<2x256xf32>
    %476 = vector.broadcast %348 : f32 to vector<2x256xf32>
    %477 = arith.mulf %476, %387 : vector<2x256xf32>
    %478 = arith.addf %475, %477 : vector<2x256xf32>
    %479 = arith.addf %458, %478 : vector<2x256xf32>
    %480 = vector.broadcast %349 : f32 to vector<2x256xf32>
    %481 = arith.mulf %480, %372 : vector<2x256xf32>
    %482 = vector.broadcast %350 : f32 to vector<2x256xf32>
    %483 = arith.mulf %482, %375 : vector<2x256xf32>
    %484 = arith.addf %481, %483 : vector<2x256xf32>
    %485 = vector.broadcast %351 : f32 to vector<2x256xf32>
    %486 = arith.mulf %485, %378 : vector<2x256xf32>
    %487 = arith.addf %484, %486 : vector<2x256xf32>
    %488 = vector.broadcast %352 : f32 to vector<2x256xf32>
    %489 = arith.mulf %488, %320 : vector<2x256xf32>
    %490 = arith.addf %487, %489 : vector<2x256xf32>
    %491 = vector.broadcast %353 : f32 to vector<2x256xf32>
    %492 = arith.mulf %491, %381 : vector<2x256xf32>
    %493 = arith.addf %490, %492 : vector<2x256xf32>
    %494 = vector.broadcast %354 : f32 to vector<2x256xf32>
    %495 = arith.mulf %494, %384 : vector<2x256xf32>
    %496 = arith.addf %493, %495 : vector<2x256xf32>
    %497 = vector.broadcast %355 : f32 to vector<2x256xf32>
    %498 = arith.mulf %497, %387 : vector<2x256xf32>
    %499 = arith.addf %496, %498 : vector<2x256xf32>
    %c240_i32_35 = arith.constant 240 : i32
    %500 = tpu.dynamic_rotate %499 by %c240_i32_35 dim 1 : vector<2x256xf32>, i32 -> vector<2x256xf32>
    %501 = vector.broadcast %81 : vector<1x256xf32> to vector<2x256xf32>
    %502 = arith.mulf %500, %501 : vector<2x256xf32>
    %503 = arith.addf %479, %502 : vector<2x256xf32>
    %504 = vector.broadcast %356 : f32 to vector<2x256xf32>
    %505 = arith.mulf %504, %372 : vector<2x256xf32>
    %506 = vector.broadcast %357 : f32 to vector<2x256xf32>
    %507 = arith.mulf %506, %375 : vector<2x256xf32>
    %508 = arith.addf %505, %507 : vector<2x256xf32>
    %509 = vector.broadcast %358 : f32 to vector<2x256xf32>
    %510 = arith.mulf %509, %378 : vector<2x256xf32>
    %511 = arith.addf %508, %510 : vector<2x256xf32>
    %512 = vector.broadcast %359 : f32 to vector<2x256xf32>
    %513 = arith.mulf %512, %320 : vector<2x256xf32>
    %514 = arith.addf %511, %513 : vector<2x256xf32>
    %515 = vector.broadcast %360 : f32 to vector<2x256xf32>
    %516 = arith.mulf %515, %381 : vector<2x256xf32>
    %517 = arith.addf %514, %516 : vector<2x256xf32>
    %518 = vector.broadcast %361 : f32 to vector<2x256xf32>
    %519 = arith.mulf %518, %384 : vector<2x256xf32>
    %520 = arith.addf %517, %519 : vector<2x256xf32>
    %521 = vector.broadcast %362 : f32 to vector<2x256xf32>
    %522 = arith.mulf %521, %387 : vector<2x256xf32>
    %523 = arith.addf %520, %522 : vector<2x256xf32>
    %c224_i32_36 = arith.constant 224 : i32
    %524 = tpu.dynamic_rotate %523 by %c224_i32_36 dim 1 : vector<2x256xf32>, i32 -> vector<2x256xf32>
    %525 = vector.broadcast %82 : vector<1x256xf32> to vector<2x256xf32>
    %526 = arith.mulf %524, %525 : vector<2x256xf32>
    %527 = arith.addf %503, %526 : vector<2x256xf32>
    %528 = vector.broadcast %363 : f32 to vector<2x256xf32>
    %529 = arith.mulf %528, %372 : vector<2x256xf32>
    %530 = vector.broadcast %364 : f32 to vector<2x256xf32>
    %531 = arith.mulf %530, %375 : vector<2x256xf32>
    %532 = arith.addf %529, %531 : vector<2x256xf32>
    %533 = vector.broadcast %365 : f32 to vector<2x256xf32>
    %534 = arith.mulf %533, %378 : vector<2x256xf32>
    %535 = arith.addf %532, %534 : vector<2x256xf32>
    %536 = vector.broadcast %366 : f32 to vector<2x256xf32>
    %537 = arith.mulf %536, %320 : vector<2x256xf32>
    %538 = arith.addf %535, %537 : vector<2x256xf32>
    %539 = vector.broadcast %367 : f32 to vector<2x256xf32>
    %540 = arith.mulf %539, %381 : vector<2x256xf32>
    %541 = arith.addf %538, %540 : vector<2x256xf32>
    %542 = vector.broadcast %368 : f32 to vector<2x256xf32>
    %543 = arith.mulf %542, %384 : vector<2x256xf32>
    %544 = arith.addf %541, %543 : vector<2x256xf32>
    %545 = vector.broadcast %369 : f32 to vector<2x256xf32>
    %546 = arith.mulf %545, %387 : vector<2x256xf32>
    %547 = arith.addf %544, %546 : vector<2x256xf32>
    %c208_i32_37 = arith.constant 208 : i32
    %548 = tpu.dynamic_rotate %547 by %c208_i32_37 dim 1 : vector<2x256xf32>, i32 -> vector<2x256xf32>
    %549 = vector.broadcast %83 : vector<1x256xf32> to vector<2x256xf32>
    %550 = arith.mulf %548, %549 : vector<2x256xf32>
    %551 = arith.addf %527, %550 : vector<2x256xf32>
    %552 = arith.negf %551 : vector<2x256xf32>
    %553 = math.exp %552 : vector<2x256xf32>
    %cst_38 = arith.constant 1.000000e+00 : f32
    %554 = vector.broadcast %cst_38 : f32 to vector<2x256xf32>
    %555 = arith.addf %554, %553 : vector<2x256xf32>
    %556 = arith.divf %554, %555 : vector<2x256xf32>
    %557 = vector.extract_strided_slice %49 {offsets = [0, 0, 0], sizes = [1, 8, 1], strides = [1, 1, 1]} : vector<2x8x1xf32> to vector<1x8x1xf32>
    %558 = vector.shape_cast %557 : vector<1x8x1xf32> to vector<8x1xf32>
    %559 = vector.extract_strided_slice %556 {offsets = [0, 0], sizes = [1, 256], strides = [1, 1]} : vector<2x256xf32> to vector<1x256xf32>
    %560 = vector.broadcast %558 : vector<8x1xf32> to vector<8x256xf32>
    %561 = vector.broadcast %559 : vector<1x256xf32> to vector<8x256xf32>
    %562 = arith.addf %560, %561 : vector<8x256xf32>
    %563 = vector.extract_strided_slice %0 {offsets = [0, 0, 0], sizes = [1, 8, 256], strides = [1, 1, 1]} : vector<2x8x256xf32> to vector<1x8x256xf32>
    %564 = vector.shape_cast %563 : vector<1x8x256xf32> to vector<8x256xf32>
    %565 = arith.mulf %562, %564 : vector<8x256xf32>
    %c0_39 = arith.constant 0 : index
    %c0_40 = arith.constant 0 : index
    %c0_41 = arith.constant 0 : index
    %566 = vector.load %arg7[%c0_39, %c0_40, %c0_41] : memref<2x8x256xf32, #tpu.memory_space<vmem>>, vector<1x8x256xf32>
    %567 = vector.shape_cast %566 : vector<1x8x256xf32> to vector<8x256xf32>
    %568 = vector.shape_cast %565 : vector<8x256xf32> to vector<1x8x256xf32>
    tpu.vector_store %arg7[%c0_39, %c0_40, %c0_41], %568 {strides = array<i32>} : memref<2x8x256xf32, #tpu.memory_space<vmem>>, vector<1x8x256xf32>,
    %569 = vector.extract_strided_slice %49 {offsets = [1, 0, 0], sizes = [1, 8, 1], strides = [1, 1, 1]} : vector<2x8x1xf32> to vector<1x8x1xf32>
    %570 = vector.shape_cast %569 : vector<1x8x1xf32> to vector<8x1xf32>
    %571 = vector.extract_strided_slice %556 {offsets = [1, 0], sizes = [1, 256], strides = [1, 1]} : vector<2x256xf32> to vector<1x256xf32>
    %572 = vector.broadcast %570 : vector<8x1xf32> to vector<8x256xf32>
    %573 = vector.broadcast %571 : vector<1x256xf32> to vector<8x256xf32>
    %574 = arith.addf %572, %573 : vector<8x256xf32>
    %575 = vector.extract_strided_slice %0 {offsets = [1, 0, 0], sizes = [1, 8, 256], strides = [1, 1, 1]} : vector<2x8x256xf32> to vector<1x8x256xf32>
    %576 = vector.shape_cast %575 : vector<1x8x256xf32> to vector<8x256xf32>
    %577 = arith.mulf %574, %576 : vector<8x256xf32>
    %c1_42 = arith.constant 1 : index
    %c0_43 = arith.constant 0 : index
    %c0_44 = arith.constant 0 : index
    %578 = vector.load %arg7[%c1_42, %c0_43, %c0_44] : memref<2x8x256xf32, #tpu.memory_space<vmem>>, vector<1x8x256xf32>
    %579 = vector.shape_cast %578 : vector<1x8x256xf32> to vector<8x256xf32>
    %580 = vector.shape_cast %577 : vector<8x256xf32> to vector<1x8x256xf32>
    tpu.vector_store %arg7[%c1_42, %c0_43, %c0_44], %580 {strides = array<i32>} : memref<2x8x256xf32, #tpu.memory_space<vmem>>, vector<1x8x256xf32>,
    return
  }
  func.func @transform_0(%arg0: i32) -> (i32, i32, i32) {
    %c0_i32 = arith.constant 0 : i32
    %c0_i32_0 = arith.constant 0 : i32
    %c0_i32_1 = arith.constant 0 : i32
    return %arg0, %c0_i32, %c0_i32_0 : i32, i32, i32
  }
  func.func @transform_1(%arg0: i32) -> (i32, i32) {
    %c0_i32 = arith.constant 0 : i32
    %c0_i32_0 = arith.constant 0 : i32
    %c0_i32_1 = arith.constant 0 : i32
    return %c0_i32, %c0_i32_0 : i32, i32
  }
  func.func @transform_2(%arg0: i32) -> (i32, i32) {
    %c0_i32 = arith.constant 0 : i32
    %c0_i32_0 = arith.constant 0 : i32
    %c0_i32_1 = arith.constant 0 : i32
    return %c0_i32, %c0_i32_0 : i32, i32
  }
  func.func @transform_3(%arg0: i32) -> (i32, i32) {
    %c0_i32 = arith.constant 0 : i32
    %c0_i32_0 = arith.constant 0 : i32
    %c0_i32_1 = arith.constant 0 : i32
    return %c0_i32, %c0_i32_0 : i32, i32
  }
  func.func @transform_4(%arg0: i32) -> i32 {
    %c0_i32 = arith.constant 0 : i32
    %c0_i32_0 = arith.constant 0 : i32
    return %c0_i32 : i32
  }
  func.func @transform_5(%arg0: i32) -> (i32, i32) {
    %c0_i32 = arith.constant 0 : i32
    %c0_i32_0 = arith.constant 0 : i32
    %c0_i32_1 = arith.constant 0 : i32
    return %c0_i32, %c0_i32_0 : i32, i32
  }
  func.func @transform_6(%arg0: i32) -> (i32, i32, i32) {
    %c0_i32 = arith.constant 0 : i32
    %c0_i32_0 = arith.constant 0 : i32
    %c0_i32_1 = arith.constant 0 : i32
    return %arg0, %c0_i32, %c0_i32_0 : i32, i32, i32
  }
}

</mosaic_0001>

<bundles_post_ra>
// kernel: tpu_custom_call.1
= control target key start
LH: loop header
LB: loop body
LE: loop exit
PB: predicated region body
PF: predicated region fallthrough
CT: control target
= control target key end

     0   :  { %s2989_s0 = inlined_call_operand.hbm [shape: f32[2,8,256], index: 0, kind: input, shape index: {}]   ;;  %s2990_s1 = inlined_call_operand.vmem [shape: f32[8,2], index: 1, kind: input, shape index: {}]   ;;  %s2991_s2 = inlined_call_operand.vmem [shape: f32[8,2], index: 2, kind: input, shape index: {}]   ;;  %s2992_s3 = inlined_call_operand.vmem [shape: f32[4,49], index: 3, kind: input, shape index: {}]   ;;  %s2993_s4 = inlined_call_operand.vmem [shape: f32[49], index: 4, kind: input, shape index: {}]   ;;  %s2994_s5 = inlined_call_operand.vmem [shape: f32[14,256], index: 5, kind: input, shape index: {}]   ;;  %s2995_s6 = inlined_call_operand.hbm [shape: f32[2,8,256], index: 6, kind: output, shape index: {}]  }
   0x1   :  { %3095 = sst [smem:[#allocation54_spill]] %s2995_s6 }
   0x2   :  { %11 = vsyncpa [#allocation3], 0 }
   0x3   :  { %12 = vsyncpa [#allocation5], 0 }
   0x4   :  { %13 = vsyncpa [#allocation4], 0  ;;  %s1576_s21 = smov [#allocation2]   ;;  %s38_s25 = sshll.u32 %s2993_s4, 4  ;;  %s39_s25 = int_to_ptr.vmem [resolvable:$true] %s38_s25 }
   0x5   :  { %s19_s22 = sshll.u32 %s1576_s21, 4  ;;  %s1514_s28 = scalar_lea.hbm %s2989_s0, 512  ;;  %s20_s22 = int_to_ptr.vmem [resolvable:$true] %s19_s22 }
   0x6   :  { %p1515_p0 = scmp.ne.s32.totalorder %s2989_s0, %s1514_s28  ;;  %p1518_p1 = scmp.lt.u32.totalorder %s1514_s28, %s2989_s0 }
   0x8   :  { %p1520_p2 = pnand %p1518_p1, %p1515_p0 }
   0xa   :  { %1523 = shalt.err (!%p1520_p2)
}
   0xb   :  { %s1524_s9 = scalar_lea.vmem %s20_s22, 512  ;;  %p1529_p4 = scmp.lt.s32.totalorder %s20_s22, %s20_s22 }
   0xc   :  { %p1525_p3 = scmp.ne.s32.totalorder %s20_s22, %s1524_s9  ;;  %p1530_p5 = scmp.lt.s32.totalorder %s1524_s9, %s1524_s9 }
   0xe   :  { %p1531_p6 = por %p1530_p5, %p1529_p4 }
  0x10   :  { %p1532_p7 = pnand %p1531_p6, %p1525_p3 }
  0x12   :  { %1535 = shalt.err (!%p1532_p7)
}
  0x13   :  { %s3032_s4 = smov 256   ;;  %s3039_s10 = smov 16  }
  0x14   :  { %25 = dma.hbm_to_vmem [thread:$0]  %s2989_s0, 512, %s20_s22, [#allocation3], %s3032_s4, %s3032_s4, %s3039_s10  }
  0x15   :  { %s1536_s13 = scalar_lea.vmem %s39_s25, 16  ;;  %p1541_p9 = scmp.lt.s32.totalorder %s39_s25, %s39_s25 }
  0x16   :  { %p1537_p8 = scmp.ne.s32.totalorder %s39_s25, %s1536_s13  ;;  %p1542_p10 = scmp.lt.s32.totalorder %s1536_s13, %s1536_s13 }
  0x18   :  { %p1543_p11 = por %p1542_p10, %p1541_p9 }
  0x1a   :  { %p1544_p12 = pnand %p1543_p11, %p1537_p8 }
  0x1c   :  { %1547 = shalt.err (!%p1544_p12)
}
  0x1d   :  { %s1579_s14 = smov [#allocation6]  }
  0x1e   :  { %41 = dma.vmem_to_smem %s39_s25, 16, %s1579_s14, [#allocation5]  }
  0x1f   :  { %1570 = dma.done.wait [#allocation3], 512  }
  0x20   :  { %1571 = vsyncadd [#allocation3], 4294966784 }
  0x21   :  { %1572 = dma.done.wait [#allocation5], 16  }
  0x22   :  { %1573 = vsyncadd [#allocation5], 4294967280 }
  0x23   :  { %50 = sfence }
  0x24   :  { %v51_v0 = vld [vmem:[#allocation2] sm:$0xff]  ;;  %v52_v1 = vld [vmem:[#allocation2 + $0x8] sm:$0xff]  ;;  %v53_v2 = vld [vmem:[#allocation2 + $0x10] sm:$0xff]  ;;  %v1580_v22 = vmov 0   ;;  %v1581_v23 = vmov 1   ;;  %v109_v31 = vlaneseq  ;;  %vm246_vm0 = vcmask 1040384  }
  0x25   :  { %v64_v3 = vmax.f32 %v51_v0, %v52_v1  ;;  %v193_v4 = vrot.slane %v51_v0, 4  ;;  %v55_v5 = vadd.f32 %v52_v1, %v51_v0  ;;  %v54_v6 = vld [vmem:[#allocation2 + $0x18] sm:$0xff]  ;;  %v208_v7 = vrot.slane %v53_v2, 4  ;;  %1442 = vset.pattern.permute.xlu1 %v1580_v22  ;;  %1441 = vset.pattern.permute.xlu0 %v1581_v23  ;;  %v1698_v34 = vld [vmem:[%s2992_s3] sm:$0xf]  ;;  %s1588_s19 = smov 2  }
  0x26   :  { %v67_v9 = vmax.f32 %v53_v2, %v54_v6  ;;  %v58_v11 = vadd.f32 %v54_v6, %v53_v2  ;;  %v199_v20 = vrot.slane %v52_v1, 4  ;;  %v214_v24 = vrot.slane %v54_v6, 4  ;;  %v1708_v46 = vld [vmem:[%s2990_s1] sm:$0xff]  ;;  %s1585_s1 = smov 3   ;;  %s1592_s22 = smov 1  }
  0x27   :  { %v194_v8 = vadd.f32 %v193_v4, %v51_v0  ;;  %65 = vmax.xlane.f32.xlu1 %v64_v3  ;;  %56 = vadd.xlane.f32.xlu0 %v55_v5  ;;  %v209_v10 = vadd.f32 %v208_v7, %v53_v2  ;;  %v223_v14 = vmax.f32 %v51_v0, %v193_v4  ;;  %v1701_v39 = vshrl.u32 %v109_v31, 7  ;;  %v1716_v49 = vld [vmem:[%s2994_s5] sm:$0xff]  ;;  %s1601_s23 = smov 127   ;;  %s1608_s24 = smov 125  }
  0x28   :  { %v235_v17 = vmax.f32 %v53_v2, %v208_v7  ;;  %v200_v28 = vadd.f32 %v199_v20, %v52_v1  ;;  %v215_v30 = vadd.f32 %v214_v24, %v54_v6  ;;  %v229_v43 = vmax.f32 %v52_v1, %v199_v20  ;;  %3097 = vst [vmem:[#allocation12_spill] sm:$0xff] %v1708_v46  ;;  %s1622_s25 = smov 126   ;;  %s3041_s26 = smov 32  }
  0x29   :  { %v195_v12 = vrot.slane %v194_v8, 2  ;;  %v210_v13 = vrot.slane %v209_v10, 2  ;;  %v224_v18 = vrot.slane %v223_v14, 2  ;;  %3096 = vst [vmem:[#allocation11_spill] sm:$0xff] %v1701_v39  ;;  %vm249_vm1 = vcmask 1041408   ;;  %s3043_s27 = smov 48  }
  0x2a   :  { %v236_v25 = vrot.slane %v235_v17, 2  ;;  %v201_v35 = vrot.slane %v200_v28, 2  ;;  %v216_v38 = vrot.slane %v215_v30, 2  ;;  %v1711_v47 = vsub.s32 0, %v1701_v39  ;;  %s3037_s28 = smov 112   ;;  %s3035_s29 = smov 96  }
  0x2b   :  { %68 = vmax.xlane.f32.xlu1 %v67_v9  ;;  %59 = vadd.xlane.f32.xlu0 %v58_v11  ;;  %v196_v15 = vadd.f32 %v195_v12, %v194_v8  ;;  %v211_v16 = vadd.f32 %v210_v13, %v209_v10  ;;  %v225_v26 = vmax.f32 %v223_v14, %v224_v18  ;;  %vm252_vm2 = vcmask 1042432   ;;  %s3033_s30 = smov 80   ;;  %s2391_s0 = sld [smem:[#allocation6 + $0x3]] }
  0x2c   :  { %v237_v32 = vmax.f32 %v235_v17, %v236_v25  ;;  %v202_v42 = vadd.f32 %v201_v35, %v200_v28  ;;  %v217_v45 = vadd.f32 %v216_v38, %v215_v30  ;;  %3098 = vst [vmem:[#allocation13_spill] sm:$0xff] %v1711_v47  ;;  %v241_v50 = vmax.f32 %v54_v6, %v214_v24  ;;  %s2395_s15 = sld [smem:[#allocation6 + $0x11]]  ;;  %s2397_s3 = sld [smem:[#allocation6 + $0x1f]] }
  0x2d   :  { %v197_v19 = vrot.slane %v196_v15, 1  ;;  %v212_v21 = vrot.slane %v211_v16, 1  ;;  %v226_v33 = vrot.slane %v225_v26, 1  ;;  %v230_v53 = vrot.slane %v229_v43, 2  ;;  %s2399_s16 = sld [smem:[#allocation6 + $0x26]]  ;;  %s2401_s17 = sld [smem:[#allocation6 + $0x2d]] }
  0x2e   :  { %v238_v40 = vrot.slane %v237_v32, 1  ;;  %v203_v52 = vrot.slane %v202_v42, 1  ;;  %v218_v54 = vrot.slane %v217_v45, 1  ;;  %v1723_v55 = vrot.slane %v1716_v49, %v1711_v47  ;;  %s2403_s18 = sld [smem:[#allocation6]]  ;;  %s2409_s20 = sld [smem:[#allocation6 + $0xe]] }
  0x2f   :  { %v198_v27 = vadd.f32 %v197_v19, %v196_v15  ;;  %v213_v29 = vadd.f32 %v212_v21, %v211_v16  ;;  %v227_v41 = vmax.f32 %v225_v26, %v226_v33  ;;  %v1726_v56 = vsub.s32 1, %v1701_v39  ;;  %v1750_v15 = vld [vmem:[%s2994_s5 + $0x8] sm:$0xff]  ;;  %s2411_s21 = sld [smem:[#allocation6 + $0x15]]  ;;  %s2421_s7 = sld [smem:[#allocation6 + $0x8]] }
  0x30   :  { %v239_v48 = vmax.f32 %v237_v32, %v238_v40  ;;  %3099 = vst [vmem:[#allocation14_spill] sm:$0xff] %v1723_v55  ;;  %v242_v58 = vrot.slane %v241_v50, 2  ;;  %v1582_v59 = vmov 7   ;;  %v204_v60 = vadd.f32 %v203_v52, %v202_v42  ;;  %3102 = vst [vmem:[#allocation17_spill] sm:$0xff] %v1750_v15  ;;  %s2423_s8 = sld [smem:[#allocation6 + $0xf]]  ;;  %s2425_s9 = sld [smem:[#allocation6 + $0x16]] }
  0x31   :  { %v206_v36 = vmul.f32 0.125, %v198_v27  ;;  %v220_v37 = vmul.f32 0.125, %v213_v29  ;;  %3100 = vst [vmem:[#allocation15_spill] sm:$0xff] %v1726_v56  ;;  %v231_v61 = vmax.f32 %v229_v43, %v230_v53  ;;  %v1583_v62 = vmov 3   ;;  %s2427_s11 = sld [smem:[#allocation6 + $0x1d]]  ;;  %s2429_s12 = sld [smem:[#allocation6 + $0x24]] }
  0x32   :  { %v219_v63 = vadd.f32 %v218_v54, %v217_v45  ;;  %v1737_v1 = vrot.slane %v1716_v49, %v1726_v56  ;;  %v243_v2 = vmax.f32 %v241_v50, %v242_v58  ;;  %v1584_v4 = vmov 8   ;;  %s2431_s13 = sld [smem:[#allocation6 + $0x2b]]  ;;  %s2435_s14 = sld [smem:[#allocation6 + $0x9]] }
  0x33   :  { %v247_v44 = vsel %vm246_vm0, %v206_v36, %v220_v37  ;;  %v232_v3 = vrot.slane %v231_v61, 1  ;;  %v207_v5 = vmul.f32 0.125, %v204_v60  ;;  %v1586_v8 = vmov 4   ;;  %s2437_s4 = sld [smem:[#allocation6 + $0x17]]  ;;  %s2451_s6 = sld [smem:[#allocation6 + $0x5]] }
  0x34   :  { %v250_v51 = vsel %vm249_vm1, %v247_v44, %v227_v41  ;;  %3101 = vst [vmem:[#allocation16_spill] sm:$0xff] %v1737_v1  ;;  %v221_v6 = vmul.f32 0.125, %v219_v63  ;;  %v244_v9 = vrot.slane %v243_v2, 1  ;;  %v1587_v12 = vmov 2  }
  0x35   :  { %v1729_v57 = vsel %vm252_vm2, %v250_v51, %v239_v48  ;;  %v233_v10 = vmax.f32 %v231_v61, %v232_v3  ;;  %v298_v13 = vsub.s32 2, %v1701_v39  ;;  %v1589_v17 = vmov 9   ;;  %3165 = sst [smem:[#allocation39_spill]] %s2411_s21 }
  0x36   :  { %v268_v0 = vmul.f32 %v1723_v55, %v1729_v57  ;;  %v287_v7 = vmul.f32 %v1737_v1, %v1729_v57  ;;  %v248_v11 = vsel %vm246_vm0, %v207_v5, %v221_v6  ;;  %v245_v14 = vmax.f32 %v243_v2, %v244_v9  ;;  %3169 = sst [smem:[#allocation43_spill]] %s2421_s7 }
  0x37   :  { %v251_v16 = vsel %vm249_vm1, %v248_v11, %v233_v10  ;;  %v1755_v18 = vrot.slane %v1750_v15, %v298_v13  ;;  %v1590_v20 = vmov 28   ;;  %v1593_v24 = vmov 12   ;;  %3170 = sst [smem:[#allocation44_spill]] %s2427_s11 }
  0x38   :  { %v1758_v19 = vsel %vm252_vm2, %v251_v16, %v245_v14  ;;  %v1594_v25 = vmov 15   ;;  %v1595_v26 = vmov 10   ;;  %v1596_v27 = vmov 35   ;;  %3171 = sst [smem:[#allocation45_spill]] %s2429_s12 }
  0x39   :  { %3103 = vst [vmem:[#allocation18_spill] sm:$0xff] %v1755_v18  ;;  %v305_v21 = vmul.f32 %v1755_v18, %v1758_v19  ;;  %v1771_v28 = vrot.slane %v1750_v15, %v1711_v47  ;;  %v1775_v29 = vsub.s32 4, %v1701_v39  ;;  %v1597_v30 = vmov 16   ;;  %3173 = sst [smem:[#allocation47_spill]] %s2437_s4  ;;  %s2453_s4 = sld [smem:[#allocation6 + $0xb]] }
  0x3a   :  { %v1782_v33 = vrot.slane %v1750_v15, %v1726_v56  ;;  %v1598_v35 = vmov 13   ;;  %v1599_v38 = vmov 11   ;;  %v1600_v40 = vmov 37   ;;  %3178 = sst [smem:[#allocation52_spill]] %s2451_s6  ;;  %s2466_s6 = sld [smem:[#allocation6 + $0x13]] }
  0x3b   :  { %3104 = vst [vmem:[#allocation19_spill] sm:$0xff] %v1771_v28  ;;  %3105 = vst [vmem:[#allocation20_spill] sm:$0xff] %v1775_v29  ;;  %v269_v32 = vmul.f32 %v1771_v28, %v1758_v19  ;;  %v1787_v36 = vrot.slane %v1716_v49, %v1775_v29  ;;  %v1602_v42 = vmov 20   ;;  %v1603_v43 = vmov 17  }
  0x3c   :  { %366 = vperm.xlu1 %1442, %v1698_v34   ;;  %3106 = vst [vmem:[#allocation21_spill] sm:$0xff] %v1782_v33  ;;  %v288_v37 = vmul.f32 %v1782_v33, %v1758_v19  ;;  %v349_v44 = vsub.s32 6, %v1701_v39  ;;  %v1802_v45 = vrot.slane %v1716_v49, %v298_v13  ;;  %v1604_v48 = vmov 44  }
  0x3d   :  { %3107 = vst [vmem:[#allocation22_spill] sm:$0xff] %v1787_v36  ;;  %v321_v41 = vmul.f32 %v1787_v36, %v1729_v57  ;;  %v1605_v51 = vmov 29   ;;  %v1606_v53 = vmov 33   ;;  %v1607_v58 = vmov 5  }
  0x3e   :  { %3108 = vst [vmem:[#allocation23_spill] sm:$0xff] %v1802_v45  ;;  %v1808_v50 = vrot.slane %v1716_v49, %v349_v44  ;;  %v304_v52 = vmul.f32 %v1802_v45, %v1729_v57  ;;  %v1610_v60 = vmov 18   ;;  %v1611_v61 = vmov 41  }
  0x3f   :  { %v1613_v63 = vmov 21   ;;  %v1615_v2 = vmov 6   ;;  %v1616_v3 = vmov 19   ;;  %v1618_v5 = vmov 42  }
  0x40   :  { %1443 = vset.pattern.permute.xlu1 %v1581_v23  ;;  %v1591_v23 = vmov 14   ;;  %3109 = vst [vmem:[#allocation24_spill] sm:$0xff] %v1808_v50  ;;  %v355_v54 = vmul.f32 %v1808_v50, %v1729_v57  ;;  %v1830_v6 = vrot.slane %v1750_v15, %v1775_v29  ;;  %v1620_v10 = vmov 32  }
  0x41   :  { %372 = vperm.xlu1 %1443, %v1698_v34   ;;  %122 = vperm.xlu0 %1441, %v1708_v46   ;;  %v1837_v11 = vsub.s32 5, %v1701_v39  ;;  %v1621_v16 = vmov 38   ;;  %vm70_vm3 = vcmask 7168   ;;  %vm82_vm4 = vcmask 15360  }
  0x42   :  { %3110 = vst [vmem:[#allocation25_spill] sm:$0xff] %v1830_v6 }
  0x43   :  { %3111 = vst [vmem:[#allocation26_spill] sm:$0xff] %v1837_v11  ;;  %v1842_v14 = vrot.slane %v1716_v49, %v1837_v11 }
  0x45   :  { %1444 = vset.pattern.permute.xlu1 %v1582_v59  ;;  %1450 = vset.pattern.permute.xlu0 %v1583_v62  ;;  %v1609_v59 = vmov 34   ;;  %v1612_v62 = vmov 30   ;;  %3112 = vst [vmem:[#allocation27_spill] sm:$0xff] %v1842_v14 }
  0x46   :  { %437 = vperm.xlu1 %1444, %v1698_v34   ;;  %388 = vperm.xlu0 %1450, %v1698_v34  }
  0x4a   :  { %1445 = vset.pattern.permute.xlu1 %v1584_v4  ;;  %270 = vrot.lane.b32.xlu0 %v268_v0, %s1585_s1  ;;  %v1614_v0 = vmov 36   ;;  %v1617_v4 = vmov 31  }
  0x4b   :  { %443 = vperm.xlu1 %1445, %v1698_v34   ;;  %1453 = vset.pattern.permute.xlu0 %v1586_v8  ;;  %v322_v8 = vmul.f32 %v1830_v6, %v1758_v19 }
  0x4e   :  { %289 = vrot.lane.b32.xlu0 %v287_v7, %s1588_s19  ;;  %v1619_v7 = vmov 43  }
  0x4f   :  { %1446 = vset.pattern.permute.xlu1 %v1587_v12 }
  0x50   :  { %380 = vperm.xlu1 %1446, %v1698_v34  }
  0x52   :  { %396 = vperm.xlu0 %1453, %v1698_v34  }
  0x54   :  { %1447 = vset.pattern.permute.xlu1 %v1589_v17 }
  0x55   :  { %451 = vperm.xlu1 %1447, %v1698_v34  }
  0x56   :  { %1456 = vset.pattern.permute.xlu0 %v1590_v20  ;;  %v338_v20 = vmul.f32 %v1842_v14, %v1729_v57 }
  0x57   :  { %639 = vperm.xlu0 %1456, %v1698_v34  }
  0x59   :  { %1448 = vset.pattern.permute.xlu1 %v1591_v23 }
  0x5a   :  { %510 = vperm.xlu1 %1448, %v1698_v34  }
  0x5b   :  { %308 = vrot.lane.b32.xlu0 %v305_v21, %s1592_s22  ;;  %v1851_v21 = vrot.slane %v1750_v15, %v1837_v11 }
  0x5c   :  { %1459 = vset.pattern.permute.xlu0 %v1593_v24 }
  0x5d   :  { %3113 = vst [vmem:[#allocation28_spill] sm:$0xff] %v1851_v21 }
  0x5e   :  { %1449 = vset.pattern.permute.xlu1 %v1594_v25  ;;  %v339_v25 = vmul.f32 %v1851_v21, %v1758_v19 }
  0x5f   :  { %516 = vperm.xlu1 %1449, %v1698_v34   ;;  %475 = vperm.xlu0 %1459, %v1698_v34  }
  0x63   :  { %1451 = vset.pattern.permute.xlu1 %v1595_v26  ;;  %1462 = vset.pattern.permute.xlu0 %v1596_v27 }
  0x64   :  { %459 = vperm.xlu1 %1451, %v1698_v34   ;;  %712 = vperm.xlu0 %1462, %v1698_v34  }
  0x68   :  { %1452 = vset.pattern.permute.xlu1 %v1597_v30  ;;  %1465 = vset.pattern.permute.xlu0 %v1598_v35  ;;  %v1623_v30 = vmov 39  }
  0x69   :  { %524 = vperm.xlu1 %1452, %v1698_v34   ;;  %483 = vperm.xlu0 %1465, %v1698_v34  }
  0x6d   :  { %272 = vrot.lane.b32.xlu1 %v269_v32, %s1585_s1  ;;  %1468 = vset.pattern.permute.xlu0 %v1600_v40 }
  0x6e   :  { %1454 = vset.pattern.permute.xlu1 %v1599_v38  ;;  %726 = vperm.xlu0 %1468, %v1698_v34  }
  0x71   :  { %291 = vrot.lane.b32.xlu1 %v288_v37, %s1588_s19 }
  0x72   :  { %323 = vrot.lane.b32.xlu0 %v321_v41, %s1601_s23 }
  0x73   :  { %1471 = vset.pattern.permute.xlu0 %v1602_v42 }
  0x75   :  { %467 = vperm.xlu1 %1454, %v1698_v34  }
  0x76   :  { %556 = vperm.xlu0 %1471, %v1698_v34  }
  0x79   :  { %1455 = vset.pattern.permute.xlu1 %v1603_v43 }
  0x7a   :  { %532 = vperm.xlu1 %1455, %v1698_v34   ;;  %1474 = vset.pattern.permute.xlu0 %v1604_v48 }
  0x7b   :  { %799 = vperm.xlu0 %1474, %v1698_v34  }
  0x7e   :  { %1457 = vset.pattern.permute.xlu1 %v1605_v51  ;;  %v1874_v51 = vrot.slane %v1750_v15, %v349_v44 }
  0x7f   :  { %645 = vperm.xlu1 %1457, %v1698_v34   ;;  %1475 = vset.pattern.permute.xlu0 %v1606_v53 }
  0x80   :  { %677 = vperm.xlu0 %1475, %v1698_v34   ;;  %3116 = vst [vmem:[#allocation31_spill] sm:$0xff] %v1874_v51 }
  0x83   :  { %306 = vrot.lane.b32.xlu1 %v304_v52, %s1592_s22 }
  0x84   :  { %1458 = vset.pattern.permute.xlu1 %v1607_v58  ;;  %357 = vrot.lane.b32.xlu0 %v355_v54, %s1608_s24  ;;  %v1624_v58 = vmov 45  }
  0x85   :  { %1478 = vset.pattern.permute.xlu0 %v1609_v59  ;;  %v356_v59 = vmul.f32 %v1874_v51, %v1758_v19 }
  0x87   :  { %404 = vperm.xlu1 %1458, %v1698_v34  }
  0x88   :  { %685 = vperm.xlu0 %1478, %v1698_v34  }
  0x8b   :  { %1460 = vset.pattern.permute.xlu1 %v1610_v60 }
  0x8c   :  { %540 = vperm.xlu1 %1460, %v1698_v34   ;;  %1481 = vset.pattern.permute.xlu0 %v1611_v61 }
  0x8d   :  { %758 = vperm.xlu0 %1481, %v1698_v34  }
  0x90   :  { %1461 = vset.pattern.permute.xlu1 %v1612_v62 }
  0x91   :  { %653 = vperm.xlu1 %1461, %v1698_v34   ;;  %1484 = vset.pattern.permute.xlu0 %v1613_v63 }
  0x95   :  { %1463 = vset.pattern.permute.xlu1 %v1614_v0 }
  0x96   :  { %718 = vperm.xlu1 %1463, %v1698_v34  }
  0x9a   :  { %1464 = vset.pattern.permute.xlu1 %v1615_v2  ;;  %v1625_v2 = vmov 40  }
  0x9b   :  { %412 = vperm.xlu1 %1464, %v1698_v34  }
  0x9f   :  { %1466 = vset.pattern.permute.xlu1 %v1616_v3 }
  0xa0   :  { %548 = vperm.xlu1 %1466, %v1698_v34  }
  0xa4   :  { %1467 = vset.pattern.permute.xlu1 %v1617_v4 }
  0xa5   :  { %661 = vperm.xlu1 %1467, %v1698_v34  }
  0xa9   :  { %1469 = vset.pattern.permute.xlu1 %v1618_v5  ;;  %v1626_v5 = vmov 46  }
  0xaa   :  { %785 = vperm.xlu1 %1469, %v1698_v34  }
  0xae   :  { %1470 = vset.pattern.permute.xlu1 %v1619_v7 }
  0xaf   :  { %791 = vperm.xlu1 %1470, %v1698_v34  }
  0xb3   :  { %325 = vrot.lane.b32.xlu1 %v322_v8, %s1601_s23 }
  0xb4   :  { %v66_v9 = vpop.xlane.xlu1 %65  ;;  %1472 = vset.pattern.permute.xlu1 %v1620_v10  ;;  %v57_v12 = vpop.xlane.xlu0 %56  ;;  %v1628_v10 = vmov 47  }
  0xb5   :  { %v62_v23 = vmul.f32 0.00390625, %v57_v12 }
  0xb7   :  { %669 = vperm.xlu1 %1472, %v1698_v34   ;;  %v1859_v26 = vsel %vm70_vm3, %v62_v23, %v66_v9  ;;  %v1627_v9 = vmov 24   ;;  %v1630_v23 = vmov 48  }
  0xb8   :  { %v69_v13 = vpop.xlane.xlu1 %68  ;;  %v60_v24 = vpop.xlane.xlu0 %59  ;;  %3114 = vst [vmem:[#allocation29_spill] sm:$0xff] %v1859_v26 }
  0xb9   :  { %v63_v32 = vmul.f32 0.00390625, %v60_v24 }
  0xbb   :  { %1473 = vset.pattern.permute.xlu1 %v1621_v16  ;;  %v1867_v41 = vsel %vm70_vm3, %v63_v32, %v69_v13  ;;  %v1629_v16 = vmov 27  }
  0xbc   :  { %734 = vperm.xlu1 %1473, %v1698_v34   ;;  %v1845_v17 = vpop.permute.xlu1 %366  ;;  %3115 = vst [vmem:[#allocation30_spill] sm:$0xff] %v1867_v41 }
  0xc0   :  { %340 = vrot.lane.b32.xlu1 %v338_v20, %s1622_s25  ;;  %v1854_v49 = vpop.permute.xlu1 %372  ;;  %v123_v27 = vpop.permute.xlu0 %122 }
  0xc1   :  { %1476 = vset.pattern.permute.xlu1 %v1623_v30  ;;  %v125_v35 = vmul.f32 %v123_v27, %v1859_v26  ;;  %v126_v42 = vmul.f32 %v123_v27, %v1867_v41  ;;  %v1631_v30 = vmov 22  }
  0xc3   :  { %v127_v37 = vsel %vm82_vm4, %v125_v35, 0.0  ;;  %v134_v53 = vsel %vm82_vm4, %v126_v42, 0.0  ;;  %v1633_v42 = vmov 25  }
  0xc4   :  { %342 = vrot.lane.b32.xlu1 %v339_v25, %s1622_s25  ;;  %v128_v38 = vrot.slane %v127_v37, 4  ;;  %v135_v61 = vrot.slane %v134_v53, 4 }
  0xc5   :  { %v1864_v40 = vpop.permute.xlu1 %437 }
  0xc6   :  { %v129_v43 = vadd.f32 %v128_v38, %v127_v37  ;;  %v136_v0 = vadd.f32 %v135_v61, %v134_v53  ;;  %v1632_v37 = vmov 23   ;;  %v389_v53 = vpop.permute.xlu0 %388 }
  0xc7   :  { %v1977_v36 = vmul.f32 %v389_v53, %v1729_v57  ;;  %v1980_v6 = vmul.f32 %v389_v53, %v1758_v19 }
  0xc8   :  { %742 = vperm.xlu1 %1476, %v1698_v34   ;;  %v130_v48 = vrot.slane %v129_v43, 2  ;;  %v137_v4 = vrot.slane %v136_v0, 2 }
  0xca   :  { %v1876_v52 = vpop.permute.xlu1 %443  ;;  %v131_v54 = vadd.f32 %v130_v48, %v129_v43  ;;  %v138_v8 = vadd.f32 %v137_v4, %v136_v0  ;;  %v1634_v48 = vmov 26  }
  0xcc   :  { %1477 = vset.pattern.permute.xlu1 %v1624_v58  ;;  %v132_v60 = vrot.slane %v131_v54, 1  ;;  %v139_v13 = vrot.slane %v138_v8, 1 }
  0xcd   :  { %807 = vperm.xlu1 %1477, %v1698_v34  }
  0xce   :  { %v1884_v63 = vadd.f32 %v132_v60, %v131_v54  ;;  %v1903_v20 = vadd.f32 %v139_v13, %v138_v8 }
  0xcf   :  { %v1882_v62 = vpop.permute.xlu1 %380 }
  0xd0   :  { %3117 = vst [vmem:[#allocation32_spill] sm:$0xff] %v1884_v63  ;;  %v2997_v44 = vmax.f32 %v1884_v63, 0.0  ;;  %3118 = vst [vmem:[#allocation33_spill] sm:$0xff] %v1903_v20  ;;  %v2996_v25 = vmax.f32 %v1903_v20, 0.0 }
  0xd1   :  { %359 = vrot.lane.b32.xlu1 %v356_v59, %s1608_s24  ;;  %v271_v59 = vpop.permute.xlu0 %270 }
  0xd2   :  { %1479 = vset.pattern.permute.xlu1 %v1625_v2  ;;  %145 = vrot.lane.b32.xlu0 %v2997_v44, %s1601_s23 }
  0xd4   :  { %v1891_v3 = vpop.permute.xlu1 %451 }
  0xd5   :  { %750 = vperm.xlu1 %1479, %v1698_v34   ;;  %v290_v61 = vpop.permute.xlu0 %289 }
  0xd6   :  { %583 = vperm.xlu0 %1484, %v1698_v34  }
  0xd9   :  { %1480 = vset.pattern.permute.xlu1 %v1626_v5  ;;  %v1895_v7 = vpop.permute.xlu1 %510  ;;  %v1928_v2 = vpop.permute.xlu0 %396 }
  0xda   :  { %815 = vperm.xlu1 %1480, %v1698_v34   ;;  %1487 = vset.pattern.permute.xlu0 %v1627_v9 }
  0xdb   :  { %605 = vperm.xlu0 %1487, %v1698_v34  }
  0xdd   :  { %v640_v8 = vpop.permute.xlu0 %639 }
  0xde   :  { %1482 = vset.pattern.permute.xlu1 %v1628_v10  ;;  %v1899_v12 = vpop.permute.xlu1 %516 }
  0xdf   :  { %823 = vperm.xlu1 %1482, %v1698_v34   ;;  %1490 = vset.pattern.permute.xlu0 %v1629_v16 }
  0xe0   :  { %629 = vperm.xlu0 %1490, %v1698_v34  }
  0xe1   :  { %v309_v9 = vpop.permute.xlu0 %308 }
  0xe3   :  { %1483 = vset.pattern.permute.xlu1 %v1630_v23  ;;  %v460_v24 = vpop.permute.xlu1 %459 }
  0xe4   :  { %831 = vperm.xlu1 %1483, %v1698_v34   ;;  %1491 = vset.pattern.permute.xlu0 %v1580_v22  ;;  %v1983_v45 = vmul.f32 %v460_v24, %v1729_v57 }
  0xe8   :  { %v1908_v27 = vpop.permute.xlu1 %524  ;;  %147 = vrot.lane.b32.xlu1 %v2996_v25, %s1601_s23  ;;  %v1953_v25 = vand.u32 127, %v109_v31 }
  0xe9   :  { %1485 = vset.pattern.permute.xlu1 %v1631_v30 }
  0xea   :  { %3120 = vst [vmem:[#allocation35_spill] sm:$0xff] %v1953_v25  ;;  %vm276_vm5 = vcmp.lt.s32.totalorder %v1953_v25, 3  ;;  %vm293_vm6 = vcmp.lt.s32.totalorder %v1953_v25, 2  ;;  %vm310_vm7 = vcmp.lt.s32.totalorder %v1953_v25, 1  ;;  %vm327_vm8 = vcmp.lt.s32.totalorder %v1953_v25, 127 }
  0xeb   :  { %vm344_vm9 = vcmp.lt.s32.totalorder %v1953_v25, 126  ;;  %vm361_vm10 = vcmp.lt.s32.totalorder %v1953_v25, 125  ;;  %vm423_vm11 = vcmp.lt.s32.totalorder %v1953_v25, 48  ;;  %vm494_vm12 = vcmp.lt.s32.totalorder %v1953_v25, 32 }
  0xec   :  { %v273_v32 = vpop.permute.xlu1 %272  ;;  %589 = vperm.xlu1 %1485, %v1698_v34   ;;  %vm567_vm13 = vcmp.lt.s32.totalorder %v1953_v25, 16  ;;  %vm696_vm14 = vcmp.lt.s32.totalorder %v1953_v25, 112  ;;  %vm769_vm15 = vcmp.lt.s32.totalorder %v1953_v25, 96  ;;  %vm842_vm0 = vcmp.lt.s32.totalorder %v1953_v25, 80 }
  0xed   :  { %v1963_v51 = vsel %vm276_vm5, %v271_v59, %v273_v32  ;;  %v1967_v14 = vsel %vm276_vm5, %v273_v32, %v271_v59  ;;  %v1990_v59 = vmul.f32 %v460_v24, %v1758_v19 }
  0xee   :  { %3121 = vst [vmem:[#allocation36_spill] sm:$0xff] %v1963_v51  ;;  %v369_v18 = vmul.f32 %v1845_v17, %v1967_v14  ;;  %v370_v1 = vmul.f32 %v1845_v17, %v1963_v51  ;;  %v440_v33 = vmul.f32 %v1864_v40, %v1967_v14  ;;  %v441_v55 = vmul.f32 %v1864_v40, %v1963_v51 }
  0xef   :  { %v642_v41 = vmul.f32 %v640_v8, %v1967_v14  ;;  %v643_v29 = vmul.f32 %v640_v8, %v1963_v51  ;;  %v513_v15 = vmul.f32 %v1895_v7, %v1967_v14  ;;  %v514_v39 = vmul.f32 %v1895_v7, %v1963_v51 }
  0xf0   :  { %v292_v35 = vpop.permute.xlu1 %291  ;;  %1486 = vset.pattern.permute.xlu1 %v1632_v37 }
  0xf1   :  { %597 = vperm.xlu1 %1486, %v1698_v34   ;;  %v1971_v31 = vsel %vm293_vm6, %v292_v35, %v290_v61  ;;  %v1987_v32 = vsel %vm293_vm6, %v290_v61, %v292_v35 }
  0xf2   :  { %3122 = vst [vmem:[#allocation37_spill] sm:$0xff] %v1987_v32  ;;  %v446_v53 = vmul.f32 %v1876_v52, %v1971_v31  ;;  %v375_v24 = vmul.f32 %v1854_v49, %v1971_v31  ;;  %v376_v28 = vmul.f32 %v1854_v49, %v1987_v32  ;;  %v447_v11 = vmul.f32 %v1876_v52, %v1987_v32 }
  0xf3   :  { %v519_v49 = vmul.f32 %v1899_v12, %v1971_v31  ;;  %v520_v52 = vmul.f32 %v1899_v12, %v1987_v32 }
  0xf4   :  { %v1915_v38 = vpop.permute.xlu1 %467  ;;  %v378_v47 = vadd.f32 %v376_v28, %v370_v1 }
  0xf5   :  { %1488 = vset.pattern.permute.xlu1 %v1633_v42  ;;  %v522_v28 = vadd.f32 %v520_v52, %v514_v39 }
  0xf6   :  { %613 = vperm.xlu1 %1488, %v1698_v34  }
  0xf9   :  { %v1918_v43 = vpop.permute.xlu1 %532 }
  0xfa   :  { %1489 = vset.pattern.permute.xlu1 %v1634_v48 }
  0xfb   :  { %621 = vperm.xlu1 %1489, %v1698_v34  }
  0xfe   :  { %v1921_v54 = vpop.permute.xlu1 %645 }
  0xff   :  { %1492 = vset.pattern.permute.xlu1 %v1580_v22  ;;  %v1938_v22 = vpop.permute.xlu0 %475 }
 0x102   :  { %v307_v58 = vpop.permute.xlu1 %306 }
 0x103   :  { %v713_v16 = vpop.permute.xlu0 %712  ;;  %v2014_v26 = vsel %vm310_vm7, %v309_v9, %v307_v58  ;;  %v2023_v56 = vsel %vm310_vm7, %v307_v58, %v309_v9  ;;  %v377_v58 = vadd.f32 %v375_v24, %v369_v18  ;;  %v521_v18 = vadd.f32 %v519_v49, %v513_v15 }
 0x104   :  { %v715_v35 = vmul.f32 %v713_v16, %v1967_v14  ;;  %v716_v17 = vmul.f32 %v713_v16, %v1963_v51  ;;  %v448_v16 = vadd.f32 %v446_v53, %v440_v33  ;;  %v454_v8 = vmul.f32 %v1891_v3, %v2014_v26 }
 0x105   :  { %v383_v9 = vmul.f32 %v1882_v62, %v2014_v26  ;;  %v527_v20 = vmul.f32 %v1908_v27, %v2014_v26  ;;  %v648_v33 = vmul.f32 %v1921_v54, %v1971_v31  ;;  %v649_v53 = vmul.f32 %v1921_v54, %v1987_v32 }
 0x106   :  { %v1924_v60 = vpop.permute.xlu1 %404  ;;  %v384_v12 = vmul.f32 %v1882_v62, %v2023_v56  ;;  %v449_v24 = vadd.f32 %v447_v11, %v441_v55  ;;  %v455_v63 = vmul.f32 %v1891_v3, %v2023_v56  ;;  %v528_v51 = vmul.f32 %v1908_v27, %v2023_v56 }
 0x107   :  { %v1944_v30 = vpop.permute.xlu0 %483  ;;  %v536_v54 = vmul.f32 %v1918_v43, %v1758_v19  ;;  %v456_v55 = vadd.f32 %v454_v8, %v448_v16  ;;  %v385_v11 = vadd.f32 %v383_v9, %v377_v58  ;;  %v529_v62 = vadd.f32 %v527_v20, %v521_v18 }
 0x108   :  { %v650_v3 = vadd.f32 %v648_v33, %v642_v41  ;;  %v651_v27 = vadd.f32 %v649_v53, %v643_v29  ;;  %v457_v52 = vadd.f32 %v455_v63, %v449_v24 }
 0x10a   :  { %v465_v9 = vadd.f32 %v1990_v59, %v457_v52 }
 0x10b   :  { %v1926_v0 = vpop.permute.xlu1 %540  ;;  %v1948_v42 = vpop.permute.xlu0 %726 }
 0x10c   :  { %v729_v39 = vmul.f32 %v1948_v42, %v2014_v26 }
 0x10f   :  { %v1959_v50 = vpop.permute.xlu0 %323 }
 0x110   :  { %v1930_v4 = vpop.permute.xlu1 %653 }
 0x111   :  { %v656_v20 = vmul.f32 %v1930_v4, %v2014_v26  ;;  %v657_v29 = vmul.f32 %v1930_v4, %v2023_v56 }
 0x113   :  { %v2005_v61 = vpop.permute.xlu0 %556  ;;  %v658_v33 = vadd.f32 %v656_v20, %v650_v3  ;;  %v659_v53 = vadd.f32 %v657_v29, %v651_v27 }
 0x114   :  { %3123 = vst [vmem:[#allocation38_spill] sm:$0xff] %v2005_v61 }
 0x115   :  { %v1932_v5 = vpop.permute.xlu1 %718 }
 0x116   :  { %v721_v1 = vmul.f32 %v1932_v5, %v1971_v31  ;;  %v722_v15 = vmul.f32 %v1932_v5, %v1987_v32  ;;  %v730_v5 = vmul.f32 %v1948_v42, %v2023_v56  ;;  %v530_v32 = vadd.f32 %v528_v51, %v522_v28 }
 0x117   :  { %v2046_v46 = vpop.permute.xlu0 %799  ;;  %v464_v42 = vadd.f32 %v1983_v45, %v456_v55  ;;  %v393_v51 = vadd.f32 %v1977_v36, %v385_v11 }
 0x118   :  { %v2063_v49 = vmul.f32 %v2046_v46, %v2014_v26  ;;  %v723_v41 = vadd.f32 %v721_v1, %v715_v35  ;;  %v724_v16 = vadd.f32 %v722_v15, %v716_v17 }
 0x11a   :  { %v1934_v34 = vpop.permute.xlu1 %412  ;;  %v2110_v18 = vadd.f32 %v730_v5, %v724_v16 }
 0x11b   :  { %v2081_v8 = vpop.permute.xlu0 %677 }
 0x11f   :  { %v1936_v10 = vpop.permute.xlu1 %548 }
 0x124   :  { %v1940_v13 = vpop.permute.xlu1 %661 }
 0x125   :  { %v664_v58 = vmul.f32 %v1940_v13, %v1729_v57  ;;  %v665_v4 = vmul.f32 %v1940_v13, %v1758_v19 }
 0x127   :  { %v666_v1 = vadd.f32 %v664_v58, %v658_v33  ;;  %v2121_v59 = vadd.f32 %v665_v4, %v659_v53 }
 0x129   :  { %v1942_v23 = vpop.permute.xlu1 %785 }
 0x12a   :  { %v788_v28 = vmul.f32 %v1942_v23, %v1967_v14 }
 0x12e   :  { %v1946_v37 = vpop.permute.xlu1 %791 }
 0x12f   :  { %3119 = vst [vmem:[#allocation34_spill] sm:$0xff] %v1946_v37  ;;  %v535_v37 = vmul.f32 %v1918_v43, %v1729_v57  ;;  %v386_v43 = vadd.f32 %v384_v12, %v378_v47  ;;  %v731_v12 = vadd.f32 %v729_v39, %v723_v41 }
 0x131   :  { %v537_v63 = vadd.f32 %v535_v37, %v529_v62  ;;  %v394_v17 = vadd.f32 %v1980_v6, %v386_v43  ;;  %v2108_v6 = vadd.f32 %v536_v54, %v530_v32 }
 0x132   :  { %v1950_v48 = vpop.permute.xlu1 %325 }
 0x133   :  { %v2079_v47 = vsel %vm327_vm8, %v1959_v50, %v1950_v48  ;;  %v2099_v45 = vsel %vm327_vm8, %v1950_v48, %v1959_v50 }
 0x134   :  { %v470_v37 = vmul.f32 %v1915_v38, %v2079_v47  ;;  %v399_v13 = vmul.f32 %v1928_v2, %v2079_v47  ;;  %v543_v32 = vmul.f32 %v1926_v0, %v2079_v47  ;;  %v400_v54 = vmul.f32 %v1928_v2, %v2099_v45 }
 0x135   :  { %v471_v11 = vmul.f32 %v1915_v38, %v2099_v45 }
 0x136   :  { %v1955_v44 = vpop.permute.xlu1 %669  ;;  %v472_v15 = vadd.f32 %v470_v37, %v464_v42  ;;  %v401_v55 = vadd.f32 %v399_v13, %v393_v51  ;;  %v545_v29 = vadd.f32 %v543_v32, %v537_v63  ;;  %v402_v41 = vadd.f32 %v400_v54, %v394_v17  ;;  %v3125_v37 = vld [vmem:[#allocation34_spill] sm:$0xff] }
 0x137   :  { %v672_v52 = vmul.f32 %v1955_v44, %v2079_v47  ;;  %v794_v13 = vmul.f32 %v3125_v37, %v1971_v31  ;;  %v544_v63 = vmul.f32 %v1926_v0, %v2099_v45  ;;  %v473_v54 = vadd.f32 %v471_v11, %v465_v9 }
 0x13b   :  { %v1974_v21 = vpop.permute.xlu1 %734 }
 0x13c   :  { %v737_v20 = vmul.f32 %v1974_v21, %v1729_v57 }
 0x13e   :  { %v739_v32 = vadd.f32 %v737_v20, %v731_v12 }
 0x13f   :  { %v2016_v40 = vpop.permute.xlu1 %340 }
 0x143   :  { %v343_v7 = vpop.permute.xlu1 %342 }
 0x144   :  { %v2092_v35 = vsel %vm344_vm9, %v2016_v40, %v343_v7  ;;  %v2115_v50 = vsel %vm344_vm9, %v343_v7, %v2016_v40  ;;  %v358_v40 = vpop.permute.xlu0 %357 }
 0x145   :  { %v478_v48 = vmul.f32 %v1938_v22, %v2092_v35  ;;  %v407_v24 = vmul.f32 %v1924_v60, %v2092_v35  ;;  %v551_v2 = vmul.f32 %v1936_v10, %v2092_v35  ;;  %v408_v27 = vmul.f32 %v1924_v60, %v2115_v50  ;;  %v3124_v60 = vld [vmem:[#allocation38_spill] sm:$0xff] }
 0x146   :  { %v479_v33 = vmul.f32 %v1938_v22, %v2115_v50  ;;  %v680_v53 = vmul.f32 %v2081_v8, %v2092_v35  ;;  %v552_v9 = vmul.f32 %v1936_v10, %v2115_v50 }
 0x147   :  { %v2065_v61 = vpop.permute.xlu1 %742  ;;  %v480_v43 = vadd.f32 %v478_v48, %v472_v15  ;;  %v409_v5 = vadd.f32 %v407_v24, %v401_v55  ;;  %v410_v48 = vadd.f32 %v408_v27, %v402_v41  ;;  %v674_v24 = vadd.f32 %v672_v52, %v666_v1 }
 0x148   :  { %v745_v17 = vmul.f32 %v2065_v61, %v2079_v47  ;;  %v686_v22 = vpop.permute.xlu0 %685  ;;  %v796_v27 = vadd.f32 %v794_v13, %v788_v28  ;;  %v546_v52 = vadd.f32 %v544_v63, %v2108_v6 }
 0x149   :  { %v682_v11 = vadd.f32 %v680_v53, %v674_v24 }
 0x14a   :  { %v747_v12 = vadd.f32 %v745_v17, %v739_v32 }
 0x14c   :  { %v2101_v36 = vpop.permute.xlu1 %807 }
 0x14d   :  { %v810_v28 = vmul.f32 %v2101_v36, %v1729_v57 }
 0x150   :  { %v360_v7 = vpop.permute.xlu1 %359 }
 0x151   :  { %v2133_v62 = vsel %vm361_vm10, %v358_v40, %v360_v7  ;;  %v2137_v3 = vsel %vm361_vm10, %v360_v7, %v358_v40 }
 0x152   :  { %v486_v39 = vmul.f32 %v1944_v30, %v2133_v62  ;;  %v415_v38 = vmul.f32 %v1934_v34, %v2133_v62  ;;  %v559_v58 = vmul.f32 %v3124_v60, %v2133_v62  ;;  %v416_v4 = vmul.f32 %v1934_v34, %v2137_v3 }
 0x153   :  { %v553_v34 = vadd.f32 %v551_v2, %v545_v29  ;;  %v487_v40 = vmul.f32 %v1944_v30, %v2137_v3  ;;  %v688_v55 = vmul.f32 %v686_v22, %v2133_v62  ;;  %v481_v30 = vadd.f32 %v479_v33, %v473_v54 }
 0x154   :  { %v751_v16 = vpop.permute.xlu1 %750  ;;  %v488_v42 = vadd.f32 %v486_v39, %v480_v43  ;;  %v417_v51 = vadd.f32 %v415_v38, %v409_v5  ;;  %v418_v15 = vadd.f32 %v416_v4, %v410_v48  ;;  %v3126_v43 = vld [vmem:[#allocation36_spill] sm:$0xff]  ;;  %v3127_v5 = vld [vmem:[#allocation37_spill] sm:$0xff]  ;;  %v673_v38 = vmul.f32 %v1955_v44, %v2099_v45 }
 0x155   :  { %v753_v0 = vmul.f32 %v751_v16, %v2092_v35  ;;  %v561_v7 = vadd.f32 %v559_v58, %v553_v34  ;;  %v789_v39 = vmul.f32 %v1942_v23, %v3126_v43  ;;  %v795_v2 = vmul.f32 %v3125_v37, %v3127_v5 }
 0x156   :  { %490 = vrot.lane.b32.xlu0 %v488_v42, %s3041_s26  ;;  %419 = vrot.lane.b32.xlu1 %v417_v51, %s3043_s27  ;;  %v738_v23 = vmul.f32 %v1974_v21, %v1758_v19  ;;  %v489_v10 = vadd.f32 %v487_v40, %v481_v30  ;;  %v690_v29 = vadd.f32 %v688_v55, %v682_v11  ;;  %v759_v51 = vpop.permute.xlu0 %758  ;;  %v3128_v11 = vld [vmem:[#allocation32_spill] sm:$0xff] }
 0x157   :  { %v755_v20 = vadd.f32 %v753_v0, %v747_v12  ;;  %v560_v41 = vmul.f32 %v3124_v60, %v2137_v3  ;;  %v797_v42 = vadd.f32 %v795_v2, %v789_v39  ;;  %v746_v58 = vmul.f32 %v2065_v61, %v2099_v45 }
 0x158   :  { %v804_v44 = vadd.f32 %v2063_v49, %v796_v27  ;;  %v554_v4 = vadd.f32 %v552_v9, %v546_v52  ;;  %v761_v6 = vmul.f32 %v759_v51, %v2133_v62  ;;  %v681_v60 = vmul.f32 %v2081_v8, %v2115_v50 }
 0x159   :  { %v816_v1 = vpop.permute.xlu1 %815  ;;  %v675_v13 = vadd.f32 %v673_v38, %v2121_v59  ;;  %v740_v61 = vadd.f32 %v738_v23, %v2110_v18  ;;  %v754_v49 = vmul.f32 %v751_v16, %v2115_v50  ;;  %v689_v34 = vmul.f32 %v686_v22, %v2137_v3 }
 0x15a   :  { %563 = vrot.lane.b32.xlu0 %v561_v7, %s3039_s10  ;;  %421 = vrot.lane.b32.xlu1 %v418_v15, %s3043_s27  ;;  %v818_v21 = vmul.f32 %v816_v1, %v2079_v47  ;;  %v812_v33 = vadd.f32 %v810_v28, %v804_v44  ;;  %v562_v63 = vadd.f32 %v560_v41, %v554_v4  ;;  %v146_v2 = vpop.permute.xlu0 %145  ;;  %v3129_v38 = vmax.f32 %v3128_v11, 0.0  ;;  %v3132_v44 = vld [vmem:[#allocation33_spill] sm:$0xff]  ;;  %s2449_s27 = sld [smem:[#allocation6 + $0x10]] }
 0x15b   :  { %v763_v17 = vadd.f32 %v761_v6, %v755_v20  ;;  %v803_v48 = vmul.f32 %v2046_v46, %v2023_v56  ;;  %v748_v24 = vadd.f32 %v746_v58, %v740_v61  ;;  %v811_v8 = vmul.f32 %v2101_v36, %v1758_v19  ;;  %v3130_v20 = vld [vmem:[#allocation12_spill] sm:$0xff] }
 0x15c   :  { %v820_v32 = vadd.f32 %v818_v21, %v812_v33  ;;  %v683_v18 = vadd.f32 %v681_v60, %v675_v13  ;;  %v819_v40 = vmul.f32 %v816_v1, %v2099_v45  ;;  %v762_v15 = vmul.f32 %v759_v51, %v2137_v3  ;;  %v3131_v51 = vld [vmem:[#allocation13_spill] sm:$0xff] }
 0x15d   :  { %v805_v59 = vadd.f32 %v803_v48, %v797_v42  ;;  %v756_v16 = vadd.f32 %v754_v49, %v748_v24  ;;  %v151_v23 = vadd.f32 %v146_v2, %v3129_v38  ;;  %v3133_v4 = vmax.f32 %v3132_v44, 0.0  ;;  %v3140_v38 = vld [vmem:[#allocation15_spill] sm:$0xff] }
 0x15e   :  { %v824_v37 = vpop.permute.xlu1 %823  ;;  %492 = vrot.lane.b32.xlu1 %v489_v10, %s3041_s26  ;;  %692 = vrot.lane.b32.xlu0 %v690_v29, %s3037_s28  ;;  %v691_v46 = vadd.f32 %v689_v34, %v683_v18  ;;  %v584_v28 = vpop.permute.xlu0 %583  ;;  %s2447_s26 = sld [smem:[#allocation6 + $0x4]] }
 0x15f   :  { %v826_v53 = vmul.f32 %v824_v37, %v2092_v35  ;;  %v813_v7 = vadd.f32 %v811_v8, %v805_v59  ;;  %v827_v36 = vmul.f32 %v824_v37, %v2115_v50  ;;  %v764_v27 = vadd.f32 %v762_v15, %v756_v16 }
 0x160   :  { %v586_v41 = vmul.f32 %v584_v28, %v1967_v14  ;;  %v587_v42 = vmul.f32 %v584_v28, %v3126_v43  ;;  %v156_v58 = vrot.slane %v151_v23, %v3131_v51  ;;  %3177 = sst [smem:[#allocation51_spill]] %s2449_s27  ;;  %s2464_s27 = sld [smem:[#allocation6 + $0x6]] }
 0x161   :  { %v828_v22 = vadd.f32 %v826_v53, %v820_v32  ;;  %v821_v9 = vadd.f32 %v819_v40, %v813_v7  ;;  %v1509_v7 = vld [vmem:[%s2994_s5] sm:$0xff] }
 0x162   :  { %565 = vrot.lane.b32.xlu1 %v562_v63, %s3039_s10  ;;  %765 = vrot.lane.b32.xlu0 %v763_v17, %s3035_s29  ;;  %v606_v61 = vpop.permute.xlu0 %605  ;;  %s2445_s10 = sld [smem:[#allocation6 + $0x19]] }
 0x163   :  { %v832_v54 = vpop.permute.xlu1 %831  ;;  %v829_v1 = vadd.f32 %v827_v36, %v821_v9  ;;  %v609_v14 = vmul.f32 %v606_v61, %v1758_v19  ;;  %v3138_v36 = vld [vmem:[#allocation17_spill] sm:$0xff] }
 0x164   :  { %v834_v0 = vmul.f32 %v832_v54, %v2133_v62  ;;  %v835_v12 = vmul.f32 %v832_v54, %v2137_v3 }
 0x166   :  { %v836_v55 = vadd.f32 %v834_v0, %v828_v22  ;;  %694 = vrot.lane.b32.xlu1 %v691_v46, %s3037_s28  ;;  %v837_v52 = vadd.f32 %v835_v12, %v829_v1  ;;  %v630_v34 = vpop.permute.xlu0 %629  ;;  %v3134_v0 = vld [vmem:[#allocation11_spill] sm:$0xff]  ;;  %s2443_s28 = sld [smem:[#allocation6 + $0x2c]]  ;;  %3179 = sst [smem:[#allocation53_spill]] %s2464_s27 }
 0x167   :  { %v148_v39 = vpop.permute.xlu1 %147  ;;  %v632_v32 = vmul.f32 %v630_v34, %v2133_v62  ;;  %v633_v18 = vmul.f32 %v630_v34, %v2137_v3 }
 0x168   :  { %838 = vrot.lane.b32.xlu0 %v836_v55, %s3033_s30  ;;  %v152_v21 = vadd.f32 %v148_v39, %v3133_v4 }
 0x16a   :  { %767 = vrot.lane.b32.xlu1 %v764_v27, %s3035_s29  ;;  %v160_v49 = vrot.slane %v152_v21, %v3131_v51  ;;  %s2441_s29 = sld [smem:[#allocation6 + $0x25]] }
 0x16b   :  { %v590_v30 = vpop.permute.xlu1 %589 }
 0x16c   :  { %77 = vperm.xlu0 %1491, %v3130_v20   ;;  %v592_v10 = vmul.f32 %v590_v30, %v1971_v31  ;;  %v593_v29 = vmul.f32 %v590_v30, %v3127_v5  ;;  %v608_v5 = vmul.f32 %v606_v61, %v1729_v57  ;;  %3176 = sst [smem:[#allocation50_spill]] %s2443_s28  ;;  %s2459_s28 = sld [smem:[#allocation6 + $0x12]] }
 0x16e   :  { %840 = vrot.lane.b32.xlu1 %v837_v52, %s3033_s30  ;;  %v594_v6 = vadd.f32 %v592_v10, %v586_v41  ;;  %v595_v60 = vadd.f32 %v593_v29, %v587_v42  ;;  %v701_v29 = vsub.s32 3, %v3134_v0  ;;  %s2439_s30 = sld [smem:[#allocation6 + $0x1e]] }
 0x170   :  { %v598_v37 = vpop.permute.xlu1 %597  ;;  %3175 = sst [smem:[#allocation49_spill]] %s2441_s29  ;;  %s2456_s29 = sld [smem:[#allocation6 + $0xc]] }
 0x171   :  { %v600_v13 = vmul.f32 %v598_v37, %v2014_v26  ;;  %v601_v31 = vmul.f32 %v598_v37, %v2023_v56 }
 0x172   :  { %163 = vrot.lane.b32.xlu1 %v156_v58, %s1592_s22 }
 0x173   :  { %v602_v43 = vadd.f32 %v600_v13, %v594_v6  ;;  %v603_v33 = vadd.f32 %v601_v31, %v595_v60 }
 0x174   :  { %3174 = sst [smem:[#allocation48_spill]] %s2439_s30  ;;  %s2521_s30 = sld [smem:[#allocation6 + $0x30]] }
 0x175   :  { %v614_v53 = vpop.permute.xlu1 %613  ;;  %v610_v63 = vadd.f32 %v608_v5, %v602_v43  ;;  %v611_v17 = vadd.f32 %v609_v14, %v603_v33  ;;  %v3145_v43 = vld [vmem:[#allocation20_spill] sm:$0xff] }
 0x176   :  { %165 = vrot.lane.b32.xlu1 %v160_v49, %s1592_s22  ;;  %v616_v26 = vmul.f32 %v614_v53, %v2079_v47  ;;  %v617_v56 = vmul.f32 %v614_v53, %v2099_v45  ;;  %v257_v45 = vld [vmem:[%s2994_s5 + $0x10] sm:$0x3f] }
 0x177   :  { %v2250_v62 = vrot.slane %v257_v45, %v3131_v51  ;;  %v2275_v23 = vrot.slane %v257_v45, %v3140_v38  ;;  %v2290_v13 = vrot.slane %v257_v45, %v701_v29  ;;  %v2300_v33 = vrot.slane %v257_v45, %v3145_v43 }
 0x178   :  { %v618_v24 = vadd.f32 %v616_v26, %v610_v63  ;;  %v619_v8 = vadd.f32 %v617_v56, %v611_v17 }
 0x179   :  { %3135 = vst [vmem:[#allocation38_spill] sm:$0xff] %v2250_v62  ;;  %3141 = vst [vmem:[#allocation32_spill] sm:$0xff] %v2275_v23 }
 0x17a   :  { %v622_v48 = vpop.permute.xlu1 %621  ;;  %3143 = vst [vmem:[#allocation13_spill] sm:$0xff] %v2290_v13  ;;  %3146 = vst [vmem:[#allocation11_spill] sm:$0xff] %v2300_v33 }
 0x17b   :  { %v624_v57 = vmul.f32 %v622_v48, %v2092_v35  ;;  %v625_v19 = vmul.f32 %v622_v48, %v2115_v50  ;;  %v258_v35 = vld [vmem:[%s2994_s5 + $0x18] sm:$0x3f]  ;;  %v428_v50 = vsub.s32 7, %v3134_v0  ;;  %s2433_s5 = sld [smem:[#allocation6 + $0x2]] }
 0x17c   :  { %v2253_v3 = vrot.slane %v258_v35, %v3131_v51  ;;  %v2278_v28 = vrot.slane %v258_v35, %v3140_v38  ;;  %v2292_v31 = vrot.slane %v258_v35, %v701_v29  ;;  %v2303_v49 = vrot.slane %v258_v35, %v3145_v43 }
 0x17d   :  { %v626_v59 = vadd.f32 %v624_v57, %v618_v24  ;;  %v627_v16 = vadd.f32 %v625_v19, %v619_v8  ;;  %v2258_v15 = vrot.slane %v1509_v7, %v428_v50  ;;  %v2261_v55 = vrot.slane %v3138_v36, %v428_v50  ;;  %v3148_v19 = vld [vmem:[#allocation26_spill] sm:$0xff] }
 0x17e   :  { %3136 = vst [vmem:[#allocation34_spill] sm:$0xff] %v2253_v3  ;;  %3142 = vst [vmem:[#allocation12_spill] sm:$0xff] %v2278_v28 }
 0x17f   :  { %v634_v54 = vadd.f32 %v632_v32, %v626_v59  ;;  %v635_v40 = vadd.f32 %v633_v18, %v627_v16  ;;  %3137 = vst [vmem:[#allocation36_spill] sm:$0xff] %v2258_v15  ;;  %3139 = vst [vmem:[#allocation37_spill] sm:$0xff] %v2261_v55  ;;  %v2315_v32 = vrot.slane %v257_v45, %v3148_v19 }
 0x180   :  { %3144 = vst [vmem:[#allocation33_spill] sm:$0xff] %v2292_v31  ;;  %3147 = vst [vmem:[#allocation17_spill] sm:$0xff] %v2303_v49  ;;  %v2318_v18 = vrot.slane %v258_v35, %v3148_v19 }
 0x181   :  { %3149 = vst [vmem:[#allocation20_spill] sm:$0xff] %v2315_v32  ;;  %3172 = sst [smem:[#allocation46_spill]] %s2433_s5 }
 0x182   :  { %3150 = vst [vmem:[#allocation26_spill] sm:$0xff] %v2318_v18  ;;  %s2513_s5 = sld [smem:[#allocation6 + $0x2f]] }
 0x183   :  { %s3195_s27 = sld [smem:[#allocation46_spill]] }
 0x1c8   :  { %v420_v22 = vpop.permute.xlu1 %419  ;;  %v491_v47 = vpop.permute.xlu0 %490 }
 0x1cc   :  { %v422_v46 = vpop.permute.xlu1 %421  ;;  %v564_v39 = vpop.permute.xlu0 %563 }
 0x1cd   :  { %v424_v27 = vsel %vm423_vm11, %v420_v22, %v422_v46  ;;  %v425_v9 = vsel %vm423_vm11, %v422_v46, %v420_v22 }
 0x1ce   :  { %v434_v52 = vmul.f32 %v2258_v15, %v425_v9  ;;  %v435_v20 = vmul.f32 %v2261_v55, %v424_v27 }
 0x1d0   :  { %v493_v2 = vpop.permute.xlu1 %492  ;;  %v693_v4 = vpop.permute.xlu0 %692 }
 0x1d1   :  { %v495_v12 = vsel %vm494_vm12, %v491_v47, %v493_v2  ;;  %v496_v1 = vsel %vm494_vm12, %v493_v2, %v491_v47 }
 0x1d2   :  { %v505_v30 = vmul.f32 %v2250_v62, %v496_v1  ;;  %v506_v11 = vmul.f32 %v2253_v3, %v495_v12 }
 0x1d4   :  { %v566_v10 = vpop.permute.xlu1 %565  ;;  %v507_v58 = vadd.f32 %v505_v30, %v434_v52  ;;  %v508_v44 = vadd.f32 %v506_v11, %v435_v20  ;;  %v766_v53 = vpop.permute.xlu0 %765  ;;  %v3151_v30 = vld [vmem:[#allocation29_spill] sm:$0xff]  ;;  %v3152_v52 = vld [vmem:[#allocation30_spill] sm:$0xff] }
 0x1d5   :  { %v568_v41 = vsel %vm567_vm13, %v564_v39, %v566_v10  ;;  %v569_v42 = vsel %vm567_vm13, %v566_v10, %v564_v39  ;;  %v3153_v10 = vld [vmem:[#allocation19_spill] sm:$0xff] }
 0x1d6   :  { %v578_v21 = vmul.f32 %v2275_v23, %v569_v42  ;;  %v579_v37 = vmul.f32 %v2278_v28, %v568_v41  ;;  %v3154_v41 = vld [vmem:[#allocation14_spill] sm:$0xff] }
 0x1d8   :  { %v580_v6 = vadd.f32 %v578_v21, %v507_v58  ;;  %v581_v60 = vadd.f32 %v579_v37, %v508_v44  ;;  %v695_v61 = vpop.permute.xlu1 %694  ;;  %v3155_v37 = vld [vmem:[#allocation21_spill] sm:$0xff] }
 0x1d9   :  { %v697_v5 = vsel %vm696_vm14, %v693_v4, %v695_v61  ;;  %v698_v14 = vsel %vm696_vm14, %v695_v61, %v693_v4 }
 0x1da   :  { %v636_v63 = vadd.f32 %v634_v54, %v580_v6  ;;  %v637_v17 = vadd.f32 %v635_v40, %v581_v60  ;;  %v707_v26 = vmul.f32 %v2290_v13, %v697_v5  ;;  %v708_v56 = vmul.f32 %v2292_v31, %v698_v14  ;;  %v839_v54 = vpop.permute.xlu0 %838  ;;  %v3156_v60 = vld [vmem:[#allocation16_spill] sm:$0xff] }
 0x1dc   :  { %v768_v34 = vpop.permute.xlu1 %767  ;;  %v709_v59 = vadd.f32 %v707_v26, %v636_v63  ;;  %v710_v16 = vadd.f32 %v708_v56, %v637_v17  ;;  %v3157_v63 = vld [vmem:[#allocation18_spill] sm:$0xff]  ;;  %v3158_v26 = vld [vmem:[#allocation23_spill] sm:$0xff] }
 0x1dd   :  { %v770_v48 = vsel %vm769_vm15, %v766_v53, %v768_v34  ;;  %v771_v24 = vsel %vm769_vm15, %v768_v34, %v766_v53 }
 0x1de   :  { %v780_v8 = vmul.f32 %v2300_v33, %v770_v48  ;;  %v781_v57 = vmul.f32 %v2303_v49, %v771_v24  ;;  %v3159_v48 = vld [vmem:[#allocation25_spill] sm:$0xff] }
 0x1e0   :  { %v841_v40 = vpop.permute.xlu1 %840  ;;  %v782_v0 = vadd.f32 %v780_v8, %v709_v59  ;;  %v783_v50 = vadd.f32 %v781_v57, %v710_v16  ;;  %v3160_v8 = vld [vmem:[#allocation22_spill] sm:$0xff]  ;;  %v3161_v16 = vld [vmem:[#allocation28_spill] sm:$0xff] }
 0x1e1   :  { %v843_v22 = vsel %vm842_vm0, %v839_v54, %v841_v40  ;;  %v844_v47 = vsel %vm842_vm0, %v841_v40, %v839_v54  ;;  %v3162_v40 = vld [vmem:[#allocation27_spill] sm:$0xff] }
 0x1e2   :  { %v853_v46 = vmul.f32 %v2315_v32, %v843_v22  ;;  %v854_v45 = vmul.f32 %v2318_v18, %v844_v47 }
 0x1e4   :  { %v855_v7 = vadd.f32 %v853_v46, %v782_v0  ;;  %v856_v36 = vadd.f32 %v854_v45, %v783_v50  ;;  %v164_v0 = vpop.permute.xlu1 %163  ;;  %v3163_v50 = vld [vmem:[#allocation31_spill] sm:$0xff]  ;;  %v3164_v45 = vld [vmem:[#allocation24_spill] sm:$0xff] }
 0x1e6   :  { %v859_v35 = vrot.slane %v855_v7, 2  ;;  %v860_v39 = vrot.slane %v856_v36, 2 }
 0x1e8   :  { %v863_v2 = vadd.f32 %v859_v35, %v855_v7  ;;  %v864_v27 = vadd.f32 %v860_v39, %v856_v36 }
 0x1ea   :  { %v2326_v9 = vmax.f32 %v863_v2, 0.0  ;;  %v2328_v12 = vmax.f32 %v864_v27, 0.0  ;;  %v2379_v27 = vld [vmem:[%s2991_s2] sm:$0xff]  ;;  %s2393_s2 = sld [smem:[#allocation6 + $0xa]] }
 0x1eb   :  { %v78_v1 = vpop.permute.xlu0 %77 }
 0x1ec   :  { %v80_v11 = vmul.f32 %v78_v1, %v3151_v30  ;;  %v81_v20 = vmul.f32 %v78_v1, %v3152_v52  ;;  %v917_v29 = vmul.f32 %v2328_v12, %v3153_v10  ;;  %v916_v42 = vmul.f32 %v2326_v9, %v3154_v41  ;;  %v166_v1 = vpop.permute.xlu1 %165 }
 0x1ed   :  { %v925_v6 = vmul.f32 %v2328_v12, %v3155_v37  ;;  %v924_v61 = vmul.f32 %v2326_v9, %v3156_v60  ;;  %v933_v17 = vmul.f32 %v2328_v12, %v3157_v63  ;;  %v932_v56 = vmul.f32 %v2326_v9, %v3158_v26 }
 0x1ee   :  { %v83_v58 = vsel %vm82_vm4, %v80_v11, 0.0  ;;  %v90_v44 = vsel %vm82_vm4, %v81_v20, 0.0  ;;  %920 = vrot.lane.b32.xlu1 %v917_v29, %s1585_s1  ;;  %918 = vrot.lane.b32.xlu0 %v916_v42, %s1585_s1  ;;  %v941_v24 = vmul.f32 %v2328_v12, %v3159_v48  ;;  %v940_v57 = vmul.f32 %v2326_v9, %v3160_v8  ;;  %s2405_s1 = sld [smem:[#allocation6 + $0x18]] }
 0x1ef   :  { %v84_v4 = vrot.slane %v83_v58, 4  ;;  %v91_v21 = vrot.slane %v90_v44, 4  ;;  %v949_v54 = vmul.f32 %v2328_v12, %v3161_v16  ;;  %v948_v22 = vmul.f32 %v2326_v9, %v3162_v40 }
 0x1f0   :  { %v957_v46 = vmul.f32 %v2328_v12, %v3163_v50  ;;  %v956_v7 = vmul.f32 %v2326_v9, %v3164_v45  ;;  %v169_v30 = vmul.f32 %v164_v0, %v2379_v27  ;;  %v170_v11 = vmul.f32 %v166_v1, %v2379_v27 }
 0x1f1   :  { %v85_v5 = vadd.f32 %v84_v4, %v83_v58  ;;  %v92_v14 = vadd.f32 %v91_v21, %v90_v44  ;;  %v977_v52 = vstv %s2391_s0  ;;  %v1018_v20 = vstv %s2393_s2  ;;  %s2475_s0 = sld [smem:[#allocation6 + $0xd]]  ;;  %s2477_s2 = sld [smem:[#allocation6 + $0x14]] }
 0x1f2   :  { %928 = vrot.lane.b32.xlu1 %v925_v6, %s1588_s19  ;;  %926 = vrot.lane.b32.xlu0 %v924_v61, %s1588_s19  ;;  %s2407_s19 = sld [smem:[#allocation6 + $0x7]]  ;;  %v1061_v10 = vstv %s2395_s15  ;;  %v1139_v29 = vstv %s2397_s3  ;;  %s3180_s15 = sld [smem:[#allocation47_spill]]  ;;  %v2519_v40 = vmul.f32 %v1018_v20, %v2328_v12 }
 0x1f3   :  { %v86_v43 = vrot.slane %v85_v5, 2  ;;  %v93_v53 = vrot.slane %v92_v14, 2  ;;  %v964_v41 = vstv %s2403_s18  ;;  %v1182_v42 = vstv %s2399_s16  ;;  %s2483_s16 = sld [smem:[#allocation6 + $0x20]]  ;;  %s2523_s3 = sld [smem:[#allocation6 + $0x1a]] }
 0x1f4   :  { %v1225_v58 = vstv %s2401_s17  ;;  %v1104_v44 = vstv %s2405_s1  ;;  %v1048_v21 = vstv %s2409_s20  ;;  %v1091_v37 = vstv %s2411_s21  ;;  %s2485_s17 = sld [smem:[#allocation6 + $0x27]]  ;;  %s3183_s1 = sld [smem:[#allocation50_spill]] }
 0x1f5   :  { %v94_v34 = vadd.f32 %v93_v53, %v92_v14  ;;  %v87_v19 = vadd.f32 %v86_v43, %v85_v5  ;;  %v1008_v14 = vstv %s2421_s7  ;;  %v3079_v43 = vstv %s2423_s8  ;;  %s2493_s21 = sld [smem:[#allocation6 + $0x28]]  ;;  %s2499_s7 = sld [smem:[#allocation6 + $0x22]] }
 0x1f6   :  { %936 = vrot.lane.b32.xlu1 %v933_v17, %s1592_s22  ;;  %934 = vrot.lane.b32.xlu0 %v932_v56, %s1592_s22  ;;  %s2413_s22 = sld [smem:[#allocation6 + $0x1c]]  ;;  %v1094_v53 = vstv %s2425_s9  ;;  %v1129_v63 = vstv %s2427_s11  ;;  %s3186_s11 = sld [smem:[#allocation52_spill]]  ;;  %v2531_v50 = vmul.f32 %v1061_v10, %v2328_v12  ;;  %v2535_v45 = vmul.f32 %v1061_v10, %v2326_v9 }
 0x1f7   :  { %v95_v59 = vrot.slane %v94_v34, 1  ;;  %v88_v47 = vrot.slane %v87_v19, 1  ;;  %v1172_v17 = vstv %s2429_s12  ;;  %s2511_s12 = sld [smem:[#allocation6 + $0x29]]  ;;  %3187 = sst [smem:[#allocation52_spill]] %s2513_s5  ;;  %v2541_v1 = vmul.f32 %v1139_v29, %v2326_v9 }
 0x1f8   :  { %v1005_v4 = vstv %s2407_s19  ;;  %s3196_s20 = sld [smem:[#allocation48_spill]] }
 0x1f9   :  { %v2368_v36 = vadd.f32 %v95_v59, %v94_v34  ;;  %v2370_v35 = vadd.f32 %v88_v47, %v87_v19  ;;  %3182 = sst [smem:[#allocation47_spill]] %s2483_s16  ;;  %v2509_v19 = vmul.f32 %v977_v52, %v2326_v9  ;;  %v2527_v47 = vmul.f32 %v1018_v20, %v2326_v9 }
 0x1fa   :  { %944 = vrot.lane.b32.xlu1 %v941_v24, %s1601_s23  ;;  %942 = vrot.lane.b32.xlu0 %v940_v57, %s1601_s23  ;;  %v2506_v57 = vmul.f32 %v977_v52, %v2328_v12  ;;  %v2550_v52 = vmul.f32 %v1225_v58, %v2328_v12  ;;  %v2553_v20 = vmul.f32 %v1225_v58, %v2326_v9 }
 0x1fb   :  { %v3070_v39 = vmax.f32 %v2368_v36, 0.0  ;;  %v3069_v2 = vmax.f32 %v2370_v35, 0.0 }
 0x1fc   :  { %3166 = sst [smem:[#allocation40_spill]] %s2413_s22  ;;  %v1126_v6 = vstv %s2413_s22 }
 0x1fd   :  { %s2491_s22 = sld [smem:[#allocation6 + $0x21]] }
 0x1fe   :  { %952 = vrot.lane.b32.xlu1 %v949_v54, %s1622_s25  ;;  %950 = vrot.lane.b32.xlu0 %v948_v22, %s1622_s25  ;;  %s2419_s25 = sld [smem:[#allocation6 + $0x1]]  ;;  %v3204_v31 = vstv %s3196_s20 }
 0x202   :  { %960 = vrot.lane.b32.xlu1 %v957_v46, %s1608_s24  ;;  %958 = vrot.lane.b32.xlu0 %v956_v7, %s1608_s24  ;;  %s2417_s24 = sld [smem:[#allocation6 + $0x2a]]  ;;  %v2538_v7 = vmul.f32 %v1139_v29, %v2328_v12  ;;  %v2558_v29 = vmul.f32 %v1104_v44, %v2326_v9 }
 0x204   :  { %3168 = sst [smem:[#allocation42_spill]] %s2419_s25  ;;  %v967_v5 = vstv %s2419_s25  ;;  %s3252_s25 = sld [smem:[#allocation52_spill]] }
 0x206   :  { %103 = vrot.lane.b32.xlu1 %v3070_v39, %s1601_s23  ;;  %101 = vrot.lane.b32.xlu0 %v3069_v2, %s1601_s23  ;;  %v2561_v39 = vmul.f32 %v1104_v44, %v2328_v12 }
 0x208   :  { %3167 = sst [smem:[#allocation41_spill]] %s2417_s24  ;;  %v1212_v61 = vstv %s2417_s24  ;;  %s2501_s24 = sld [smem:[#allocation6 + $0x2e]] }
 0x20a   :  { %175 = vrot.lane.b32.xlu1 %v170_v11, %s1601_s23  ;;  %173 = vrot.lane.b32.xlu0 %v169_v30, %s1601_s23  ;;  %s2415_s23 = sld [smem:[#allocation6 + $0x23]]  ;;  %v2544_v30 = vmul.f32 %v1182_v42, %v2328_v12  ;;  %v2547_v11 = vmul.f32 %v1182_v42, %v2326_v9 }
 0x20e   :  { %3185 = sst [smem:[#allocation50_spill]] %s2501_s24 }
 0x20f   :  { %s3250_s24 = sld [smem:[#allocation50_spill]] }
 0x210   :  { %v1169_v60 = vstv %s2415_s23  ;;  %s3197_s23 = sld [smem:[#allocation49_spill]] }
 0x260   :  { %v921_v9 = vpop.permute.xlu1 %920  ;;  %v919_v12 = vpop.permute.xlu0 %918 }
 0x261   :  { %v922_v10 = vsel %vm276_vm5, %v919_v12, %v921_v9  ;;  %v923_v2 = vsel %vm276_vm5, %v921_v9, %v919_v12 }
 0x262   :  { %v965_v42 = vmul.f32 %v964_v41, %v923_v2  ;;  %v966_v44 = vmul.f32 %v964_v41, %v922_v10  ;;  %v2587_v0 = vmul.f32 %v1005_v4, %v923_v2  ;;  %v1007_v22 = vmul.f32 %v1005_v4, %v922_v10 }
 0x263   :  { %v2593_v46 = vmul.f32 %v1048_v21, %v922_v10  ;;  %v1092_v9 = vmul.f32 %v1091_v37, %v923_v2  ;;  %v1093_v12 = vmul.f32 %v1091_v37, %v922_v10  ;;  %v2601_v41 = vmul.f32 %v1126_v6, %v923_v2 }
 0x264   :  { %v1128_v58 = vmul.f32 %v1126_v6, %v922_v10  ;;  %v2607_v4 = vmul.f32 %v1169_v60, %v923_v2  ;;  %v1171_v54 = vmul.f32 %v1169_v60, %v922_v10  ;;  %v2613_v16 = vmul.f32 %v1212_v61, %v923_v2  ;;  %v929_v59 = vpop.permute.xlu1 %928  ;;  %v927_v37 = vpop.permute.xlu0 %926 }
 0x265   :  { %v1214_v8 = vmul.f32 %v1212_v61, %v922_v10  ;;  %v930_v24 = vsel %vm293_vm6, %v927_v37, %v929_v59  ;;  %v2621_v6 = vsel %vm293_vm6, %v929_v59, %v927_v37  ;;  %v2625_v48 = vmul.f32 %v1048_v21, %v923_v2 }
 0x266   :  { %v968_v60 = vmul.f32 %v967_v5, %v2621_v6  ;;  %v969_v34 = vmul.f32 %v967_v5, %v930_v24  ;;  %v1009_v61 = vmul.f32 %v1008_v14, %v2621_v6  ;;  %v1010_v10 = vmul.f32 %v1008_v14, %v930_v24 }
 0x267   :  { %v2639_v56 = vmul.f32 %v3079_v43, %v930_v24  ;;  %v1095_v2 = vmul.f32 %v1094_v53, %v2621_v6  ;;  %v1096_v21 = vmul.f32 %v1094_v53, %v930_v24  ;;  %v2649_v59 = vmul.f32 %v1129_v63, %v2621_v6 }
 0x268   :  { %v971_v5 = vadd.f32 %v969_v34, %v966_v44  ;;  %v1012_v37 = vadd.f32 %v1010_v10, %v1007_v22  ;;  %v1131_v14 = vmul.f32 %v1129_v63, %v930_v24  ;;  %v2656_v43 = vmul.f32 %v1172_v17, %v2621_v6  ;;  %v937_v26 = vpop.permute.xlu1 %936  ;;  %v935_v38 = vpop.permute.xlu0 %934 }
 0x269   :  { %v1097_v53 = vadd.f32 %v1095_v2, %v1092_v9  ;;  %v1098_v18 = vadd.f32 %v1096_v21, %v1093_v12  ;;  %v1174_v32 = vmul.f32 %v1172_v17, %v930_v24  ;;  %v3198_v34 = vstv %s2431_s13 }
 0x26a   :  { %v2663_v44 = vmul.f32 %v3198_v34, %v2621_v6  ;;  %v2665_v22 = vadd.f32 %v1131_v14, %v1128_v58  ;;  %v3199_v63 = vmov %v3198_v34  ;;  %v938_v49 = vsel %vm310_vm7, %v935_v38, %v937_v26 }
 0x26b   :  { %v1217_v10 = vmul.f32 %v3199_v63, %v930_v24  ;;  %v2673_v33 = vsel %vm310_vm7, %v937_v26, %v935_v38  ;;  %v2675_v9 = vadd.f32 %v1174_v32, %v1171_v54  ;;  %v3200_v17 = vstv %s3195_s27 }
 0x26c   :  { %v974_v12 = vmul.f32 %v3200_v17, %v938_v49  ;;  %v3201_v2 = vstv %s2435_s14  ;;  %v3202_v58 = vstv %s3180_s15  ;;  %v2690_v38 = vmul.f32 %v3204_v31, %v938_v49  ;;  %v945_v54 = vpop.permute.xlu1 %944  ;;  %v943_v17 = vpop.permute.xlu0 %942 }
 0x26d   :  { %v1015_v21 = vmul.f32 %v3201_v2, %v938_v49  ;;  %v1100_v14 = vmul.f32 %v3202_v58, %v2673_v33  ;;  %v2684_v24 = vadd.f32 %v1217_v10, %v1214_v8  ;;  %v3203_v34 = vmov %v3202_v58 }
 0x26e   :  { %v1101_v63 = vmul.f32 %v3203_v34, %v938_v49  ;;  %v3205_v32 = vstv %s3197_s23  ;;  %v3206_v2 = vstv %s3183_s1  ;;  %v2704_v8 = vsel %vm327_vm8, %v943_v17, %v945_v54 }
 0x26f   :  { %v2694_v26 = vmul.f32 %v3205_v32, %v938_v49  ;;  %v2696_v13 = vadd.f32 %v1100_v14, %v1097_v53  ;;  %v2700_v28 = vmul.f32 %v3206_v2, %v938_v49  ;;  %v2708_v10 = vsel %vm327_vm8, %v945_v54, %v943_v17 }
 0x270   :  { %v2710_v31 = vadd.f32 %v1101_v63, %v1098_v18  ;;  %v3207_v58 = vstv %s2445_s10  ;;  %v976_v32 = vadd.f32 %v974_v12, %v971_v5  ;;  %v3210_v2 = vstv %s2447_s26  ;;  %v951_v15 = vpop.permute.xlu0 %950  ;;  %s3217_s10 = sld [smem:[#allocation53_spill]]  ;;  %s3220_s26 = sld [smem:[#allocation51_spill]] }
 0x271   :  { %v2715_v34 = vmul.f32 %v3207_v58, %v2704_v8  ;;  %v3208_v53 = vmov %v3207_v58  ;;  %v984_v23 = vmul.f32 %v3210_v2, %v2708_v10  ;;  %v970_v55 = vadd.f32 %v968_v60, %v965_v42  ;;  %v953_v58 = vpop.permute.xlu1 %952 }
 0x272   :  { %v2720_v14 = vmul.f32 %v3208_v53, %v2708_v10  ;;  %v3211_v54 = vstv %s3195_s27  ;;  %v3212_v63 = vmov %v3210_v2  ;;  %v981_v53 = vadd.f32 %v2506_v57, %v976_v32 }
 0x273   :  { %v973_v18 = vmul.f32 %v3211_v54, %v2673_v33  ;;  %v983_v17 = vmul.f32 %v3212_v63, %v2704_v8  ;;  %v1017_v3 = vadd.f32 %v1015_v21, %v1012_v37  ;;  %v3213_v5 = vstv %s2453_s4 }
 0x274   :  { %3209 = vst [vmem:[#allocation29_spill] sm:$0xff] %v2720_v14  ;;  %v1025_v12 = vmul.f32 %v3213_v5, %v2708_v10  ;;  %v1011_v2 = vadd.f32 %v1009_v61, %v2587_v0  ;;  %v2738_v42 = vsel %vm344_vm9, %v951_v15, %v953_v58  ;;  %v2742_v60 = vsel %vm344_vm9, %v953_v58, %v951_v15 }
 0x275   :  { %v975_v54 = vadd.f32 %v973_v18, %v970_v55  ;;  %v3214_v63 = vstv %s2435_s14  ;;  %v986_v57 = vadd.f32 %v984_v23, %v981_v53  ;;  %v3215_v37 = vstv %s3186_s11  ;;  %v961_v53 = vpop.permute.xlu1 %960 }
 0x276   :  { %v1014_v62 = vmul.f32 %v3214_v63, %v2673_v33  ;;  %v989_v21 = vmul.f32 %v3215_v37, %v2742_v60  ;;  %v3216_v32 = vmov %v3215_v37  ;;  %v1022_v61 = vadd.f32 %v2519_v40, %v1017_v3  ;;  %v959_v63 = vpop.permute.xlu0 %958 }
 0x277   :  { %v988_v0 = vmul.f32 %v3216_v32, %v2738_v42  ;;  %v980_v5 = vadd.f32 %v2509_v19, %v975_v54  ;;  %v3218_v15 = vstv %s2456_s29  ;;  %v3219_v18 = vstv %s2453_s4  ;;  %s3231_s4 = smov 48   ;;  %s3233_s29 = sld [smem:[#allocation47_spill]] }
 0x278   :  { %v1030_v58 = vmul.f32 %v3218_v15, %v2742_v60  ;;  %v1016_v55 = vadd.f32 %v1014_v62, %v1011_v2  ;;  %v1024_v23 = vmul.f32 %v3219_v18, %v2704_v8  ;;  %v991_v37 = vadd.f32 %v989_v21, %v986_v57 }
 0x279   :  { %v1027_v32 = vadd.f32 %v1025_v12, %v1022_v61  ;;  %v3221_v14 = vmov %v3218_v15  ;;  %v1055_v19 = vadd.f32 %v2639_v56, %v2593_v46  ;;  %v2768_v40 = vsel %vm361_vm10, %v959_v63, %v961_v53 }
 0x27a   :  { %v1029_v3 = vmul.f32 %v3221_v14, %v2738_v42  ;;  %v2772_v62 = vsel %vm361_vm10, %v961_v53, %v959_v63  ;;  %v985_v2 = vadd.f32 %v983_v17, %v980_v5  ;;  %v1021_v54 = vadd.f32 %v2527_v47, %v1016_v55  ;;  %v104_v5 = vpop.permute.xlu1 %103  ;;  %v102_v55 = vpop.permute.xlu0 %101 }
 0x27b   :  { %v3222_v12 = vstv %s3217_s10  ;;  %v1032_v56 = vadd.f32 %v1030_v58, %v1027_v32  ;;  %v3224_v46 = vstv %s2475_s0  ;;  %v3226_v17 = vstv %s3220_s26 }
 0x27c   :  { %v994_v57 = vmul.f32 %v3222_v12, %v2772_v62  ;;  %v3223_v14 = vmov %v3222_v12  ;;  %v1035_v61 = vmul.f32 %v3224_v46, %v2772_v62  ;;  %v990_v15 = vadd.f32 %v988_v0, %v985_v2 }
 0x27d   :  { %v993_v21 = vmul.f32 %v3223_v14, %v2768_v40  ;;  %v1026_v18 = vadd.f32 %v1024_v23, %v1021_v54  ;;  %v3225_v53 = vmov %v3224_v46  ;;  %v1058_v47 = vmul.f32 %v3226_v17, %v938_v49 }
 0x27e   :  { %v1034_v63 = vmul.f32 %v3225_v53, %v2768_v40  ;;  %v996_v12 = vadd.f32 %v994_v57, %v991_v37  ;;  %v1037_v25 = vadd.f32 %v1035_v61, %v1032_v56  ;;  %v3227_v14 = vstv %s2459_s28  ;;  %s3240_s28 = smov 32  }
 0x27f   :  { %v1068_v58 = vmul.f32 %v3227_v14, %v2708_v10  ;;  %v3228_v32 = vstv %s2466_s6  ;;  %v3229_v23 = vmax.f32 %v2368_v36, 0.0  ;;  %v3230_v54 = vmax.f32 %v2370_v35, 0.0  ;;  %s2848_s6 = sld [smem:[#allocation6 + $0x1b]] }
 0x280   :  { %v1073_v0 = vmul.f32 %v3228_v32, %v2742_v60  ;;  %v995_v49 = vadd.f32 %v993_v21, %v990_v15  ;;  %v1031_v53 = vadd.f32 %v1029_v3, %v1026_v18  ;;  %999 = vrot.lane.b32.xlu1 %v996_v12, %s3231_s4  ;;  %v1060_v37 = vadd.f32 %v1058_v47, %v1055_v19 }
 0x281   :  { %v108_v2 = vadd.f32 %v104_v5, %v3229_v23  ;;  %v107_v46 = vadd.f32 %v102_v55, %v3230_v54  ;;  %v3232_v57 = vstv %s2477_s2  ;;  %v3234_v61 = vstv %s2423_s8  ;;  %s1640_s8 = smov [#allocation7]  }
 0x282   :  { %v1078_v56 = vmul.f32 %v3232_v57, %v2772_v62  ;;  %v1052_v17 = vmul.f32 %v3234_v61, %v2621_v6  ;;  %v3235_v36 = vstv %s3220_s26  ;;  %997 = vrot.lane.b32.xlu0 %v995_v49, %s3231_s4  ;;  %v1036_v3 = vadd.f32 %v1034_v63, %v1031_v53  ;;  %s1311_s9 = sshll.u32 %s1640_s8, 4  ;;  %s1312_s9 = int_to_ptr.vmem [resolvable:$true] %s1311_s9 }
 0x283   :  { %v1057_v5 = vmul.f32 %v3235_v36, %v2673_v33  ;;  %v116_v35 = vrot.slane %v108_v2, %v3131_v51  ;;  %v112_v55 = vrot.slane %v107_v46, %v3131_v51  ;;  %v3236_v19 = vmov %v3227_v14  ;;  %s1548_s11 = scalar_lea.vmem %s1312_s9, 512  ;;  %p1553_p0 = scmp.lt.s32.totalorder %s1312_s9, %s1312_s9 }
 0x284   :  { %v1067_v21 = vmul.f32 %v3236_v19, %v2704_v8  ;;  %v1065_v15 = vadd.f32 %v2531_v50, %v1060_v37  ;;  %v1054_v18 = vadd.f32 %v1052_v17, %v2625_v48  ;;  %v3237_v6 = vmov %v3228_v32  ;;  %v176_v50 = vpop.permute.xlu1 %175  ;;  %v174_v48 = vpop.permute.xlu0 %173  ;;  %1040 = vrot.lane.b32.xlu1 %v1037_v25, %s3240_s28  ;;  %p1549_p13 = scmp.ne.s32.totalorder %s1312_s9, %s1548_s11  ;;  %p1554_p1 = scmp.lt.s32.totalorder %s1548_s11, %s1548_s11 }
 0x285   :  { %v1072_v47 = vmul.f32 %v3237_v6, %v2738_v42  ;;  %v3238_v12 = vmov %v3232_v57  ;;  %v118_v32 = vmul.f32 %v116_v35, %v2379_v27  ;;  %v117_v23 = vmul.f32 %v112_v55, %v2379_v27 }
 0x286   :  { %v1077_v14 = vmul.f32 %v3238_v12, %v2768_v40  ;;  %v1138_v63 = vadd.f32 %v2690_v38, %v2665_v22  ;;  %v3239_v2 = vstv %s3233_s29  ;;  %v1070_v46 = vadd.f32 %v1068_v58, %v1065_v15  ;;  %1038 = vrot.lane.b32.xlu0 %v1036_v3, %s3240_s28  ;;  %p1555_p2 = por %p1554_p1, %p1553_p0 }
 0x287   :  { %v1146_v54 = vmul.f32 %v3239_v2, %v2708_v10  ;;  %v1059_v49 = vadd.f32 %v1057_v5, %v1054_v18  ;;  %v3241_v53 = vstv %s2491_s22  ;;  %v3242_v27 = vstv %s2499_s7  ;;  %s3248_s22 = smov 16   ;;  %s3257_s7 = smov 112  }
 0x288   :  { %v1151_v37 = vmul.f32 %v3241_v53, %v2742_v60  ;;  %v1156_v57 = vmul.f32 %v3242_v27, %v2772_v62  ;;  %v180_v61 = vadd.f32 %v176_v50, %v118_v32  ;;  %v179_v22 = vadd.f32 %v174_v48, %v117_v23  ;;  %p1556_p3 = pnand %p1555_p2, %p1549_p13 }
 0x289   :  { %v1143_v38 = vadd.f32 %v2538_v7, %v1138_v63  ;;  %v1132_v17 = vadd.f32 %v2649_v59, %v2601_v41  ;;  %v1075_v25 = vadd.f32 %v1073_v0, %v1070_v46  ;;  %v1064_v58 = vadd.f32 %v2535_v45, %v1059_v49 }
 0x28a   :  { %v3243_v36 = vstv %s3196_s20  ;;  %v3244_v35 = vmov %v3239_v2  ;;  %v1325_v19 = vmul.f32 -1.442695, %v180_v61  ;;  %v1324_v3 = vmul.f32 -1.442695, %v179_v22 }
 0x28b   :  { %v1135_v5 = vmul.f32 %v3243_v36, %v2673_v33  ;;  %v1145_v55 = vmul.f32 %v3244_v35, %v2704_v8  ;;  %v1148_v15 = vadd.f32 %v1146_v54, %v1143_v38  ;;  %v3245_v7 = vmov %v3241_v53 }
 0x28c   :  { %v1150_v18 = vmul.f32 %v3245_v7, %v2738_v42  ;;  %v1080_v41 = vadd.f32 %v1078_v56, %v1075_v25  ;;  %v1069_v59 = vadd.f32 %v1067_v21, %v1064_v58  ;;  %v3246_v45 = vmov %v3242_v27 }
 0x28d   :  { %v1137_v0 = vadd.f32 %v1135_v5, %v1132_v17  ;;  %v1155_v6 = vmul.f32 %v3246_v45, %v2768_v40  ;;  %1493 = vpow2.f32 %v1325_v19  ;;  %v1153_v12 = vadd.f32 %v1151_v37, %v1148_v15 }
 0x28e   :  { %v1181_v32 = vadd.f32 %v2694_v26, %v2675_v9  ;;  %v3247_v23 = vstv %s2485_s17  ;;  %1495 = vpow2.f32 %v1324_v3  ;;  %1083 = vrot.lane.b32.xlu1 %v1080_v41, %s3248_s22  ;;  %v1074_v56 = vadd.f32 %v1072_v47, %v1069_v59 }
 0x28f   :  { %v1189_v63 = vmul.f32 %v3247_v23, %v2708_v10  ;;  %v1142_v21 = vadd.f32 %v2541_v1, %v1137_v0  ;;  %v3249_v2 = vstv %s2493_s21  ;;  %v1158_v50 = vadd.f32 %v1156_v57, %v1153_v12  ;;  %s3265_s21 = smov 96  }
 0x290   :  { %v1194_v54 = vmul.f32 %v3249_v2, %v2742_v60  ;;  %v1186_v48 = vadd.f32 %v2544_v30, %v1181_v32  ;;  %v3251_v9 = vstv %s2511_s12  ;;  %v1175_v46 = vadd.f32 %v2656_v43, %v2607_v4 }
 0x291   :  { %v1199_v26 = vmul.f32 %v3251_v9, %v2772_v62  ;;  %v1079_v49 = vadd.f32 %v1077_v14, %v1074_v56  ;;  %v1147_v53 = vadd.f32 %v1145_v55, %v1142_v21  ;;  %v3253_v47 = vstv %s3197_s23 }
 0x292   :  { %v1178_v1 = vmul.f32 %v3253_v47, %v2673_v33  ;;  %v3254_v37 = vmov %v3247_v23  ;;  %v1191_v57 = vadd.f32 %v1189_v63, %v1186_v48  ;;  %v3255_v30 = vmov %v3249_v2  ;;  %1161 = vrot.lane.b32.xlu1 %v1158_v50, %s3257_s7 }
 0x293   :  { %v1188_v27 = vmul.f32 %v3254_v37, %v2704_v8  ;;  %v1193_v61 = vmul.f32 %v3255_v30, %v2738_v42  ;;  %v3256_v22 = vmov %v3251_v9  ;;  %v1224_v43 = vadd.f32 %v2700_v28, %v2684_v24  ;;  %1081 = vrot.lane.b32.xlu0 %v1079_v49, %s3248_s22 }
 0x294   :  { %v1198_v38 = vmul.f32 %v3256_v22, %v2768_v40  ;;  %v1152_v4 = vadd.f32 %v1150_v18, %v1147_v53  ;;  %v1180_v14 = vadd.f32 %v1178_v1, %v1175_v46  ;;  %v3258_v17 = vstv %s3250_s24 }
 0x295   :  { %v1232_v25 = vmul.f32 %v3258_v17, %v2708_v10  ;;  %v1119_v58 = vstv %s2848_s6  ;;  %v1196_v36 = vadd.f32 %v1194_v54, %v1191_v57  ;;  %v1229_v5 = vadd.f32 %v2550_v52, %v1224_v43 }
 0x296   :  { %v3259_v35 = vstv %s3252_s25  ;;  %v3260_v28 = vstv %s2521_s30  ;;  %v1157_v19 = vadd.f32 %v1155_v6, %v1152_v4  ;;  %v1185_v3 = vadd.f32 %v2547_v11, %v1180_v14  ;;  %s3269_s30 = smov 80  }
 0x297   :  { %v1237_v55 = vmul.f32 %v3259_v35, %v2742_v60  ;;  %v1242_v24 = vmul.f32 %v3260_v28, %v2772_v62  ;;  %v1218_v15 = vadd.f32 %v2663_v44, %v2613_v16  ;;  %v3261_v10 = vstv %s3183_s1  ;;  %v1494_v44 = vpop.eup %1493 }
 0x298   :  { %v1221_v7 = vmul.f32 %v3261_v10, %v2673_v33  ;;  %v1201_v18 = vadd.f32 %v1199_v26, %v1196_v36  ;;  %v1234_v41 = vadd.f32 %v1232_v25, %v1229_v5  ;;  %v3262_v52 = vmov %v3258_v17  ;;  %1159 = vrot.lane.b32.xlu0 %v1157_v19, %s3257_s7  ;;  %v1496_v2 = vpop.eup %1495  ;;  %v3268_v26 = vld [vmem:[#allocation29_spill] sm:$0xff]  ;;  %v3271_v17 = vld [vmem:[#allocation38_spill] sm:$0xff]  ;;  %v3275_v10 = vld [vmem:[#allocation32_spill] sm:$0xff] }
 0x299   :  { %v1231_v59 = vmul.f32 %v3262_v52, %v2704_v8  ;;  %v3263_v0 = vmov %v3259_v35  ;;  %v1190_v6 = vadd.f32 %v1188_v27, %v1185_v3  ;;  %v3264_v12 = vmov %v3260_v28  ;;  %v3274_v3 = vld [vmem:[#allocation37_spill] sm:$0xff] }
 0x29a   :  { %v1236_v45 = vmul.f32 %v3263_v0, %v2738_v42  ;;  %v1223_v11 = vadd.f32 %v1221_v7, %v1218_v15  ;;  %v1241_v32 = vmul.f32 %v3264_v12, %v2768_v40  ;;  %v1107_v16 = vadd.f32 %v2558_v29, %v2696_v13  ;;  %1204 = vrot.lane.b32.xlu1 %v1201_v18, %s3265_s21  ;;  %v3276_v18 = vld [vmem:[#allocation12_spill] sm:$0xff] }
 0x29b   :  { %v1239_v33 = vadd.f32 %v1237_v55, %v1234_v41  ;;  %v1108_v8 = vadd.f32 %v2561_v39, %v2710_v31  ;;  %v3266_v23 = vstv %s2523_s3  ;;  %v188_v54 = vadd.f32 1.0, %v1494_v44 }
 0x29c   :  { %v1115_v63 = vmul.f32 %v3266_v23, %v2738_v42  ;;  %v3267_v56 = vmov %v3266_v23  ;;  %v1195_v50 = vadd.f32 %v1193_v61, %v1190_v6  ;;  %v1228_v48 = vadd.f32 %v2553_v20, %v1223_v11  ;;  %v3278_v23 = vld [vmem:[#allocation33_spill] sm:$0xff] }
 0x29d   :  { %v1116_v21 = vmul.f32 %v3267_v56, %v2742_v60  ;;  %v1112_v13 = vadd.f32 %v2715_v34, %v1107_v16  ;;  %v187_v29 = vadd.f32 1.0, %v1496_v2  ;;  %v1244_v9 = vadd.f32 %v1242_v24, %v1239_v33  ;;  %v3273_v24 = vld [vmem:[#allocation36_spill] sm:$0xff]  ;;  %v3277_v33 = vld [vmem:[#allocation13_spill] sm:$0xff] }
 0x29e   :  { %v1113_v46 = vadd.f32 %v3268_v26, %v1108_v8  ;;  %v1120_v49 = vmul.f32 %v1119_v58, %v2768_v40  ;;  %1497 = vrcp.f32 %v188_v54  ;;  %v1200_v39 = vadd.f32 %v1198_v38, %v1195_v50  ;;  %v3279_v54 = vld [vmem:[#allocation11_spill] sm:$0xff] }
 0x29f   :  { %v1233_v31 = vadd.f32 %v1231_v59, %v1228_v48  ;;  %v1117_v42 = vadd.f32 %v1115_v63, %v1112_v13  ;;  %1499 = vrcp.f32 %v187_v29  ;;  %1247 = vrot.lane.b32.xlu1 %v1244_v9, %s3269_s30  ;;  %v1121_v53 = vmul.f32 %v1119_v58, %v2772_v62  ;;  %v3272_v58 = vld [vmem:[#allocation34_spill] sm:$0xff]  ;;  %v3280_v48 = vld [vmem:[#allocation17_spill] sm:$0xff] }
 0x2a0   :  { %v1118_v60 = vadd.f32 %v1116_v21, %v1113_v46  ;;  %1202 = vrot.lane.b32.xlu0 %v1200_v39, %s3265_s21 }
 0x2a1   :  { %v1238_v20 = vadd.f32 %v1236_v45, %v1233_v31  ;;  %v1122_v34 = vadd.f32 %v1120_v49, %v1117_v42 }
 0x2a2   :  { %v1123_v47 = vadd.f32 %v1121_v53, %v1118_v60  ;;  %v3281_v60 = vld [vmem:[#allocation20_spill] sm:$0xff] }
 0x2a3   :  { %v1243_v1 = vadd.f32 %v1241_v32, %v1238_v20  ;;  %v3282_v20 = vld [vmem:[#allocation26_spill] sm:$0xff] }
 0x2a5   :  { %1245 = vrot.lane.b32.xlu0 %v1243_v1, %s3269_s30 }
 0x2a8   :  { %v1498_v37 = vpop.eup %1497 }
 0x2a9   :  { %v1500_v40 = vpop.eup %1499  ;;  %1288 = vperm.xlu1 %1492, %v1498_v37  }
 0x2aa   :  { %1269 = vperm.xlu0 %1491, %v1500_v40  }
 0x2f2   :  { %v1000_v27 = vpop.permute.xlu1 %999 }
 0x2f4   :  { %v998_v57 = vpop.permute.xlu0 %997 }
 0x2f5   :  { %v1001_v4 = vsel %vm423_vm11, %v998_v57, %v1000_v27  ;;  %v1002_v14 = vsel %vm423_vm11, %v1000_v27, %v998_v57 }
 0x2f6   :  { %v1041_v30 = vpop.permute.xlu1 %1040  ;;  %v1003_v19 = vmul.f32 %v1002_v14, %v3273_v24  ;;  %v1004_v15 = vmul.f32 %v1001_v4, %v3274_v3 }
 0x2f8   :  { %v1039_v61 = vpop.permute.xlu0 %1038 }
 0x2f9   :  { %v1042_v62 = vsel %vm494_vm12, %v1039_v61, %v1041_v30  ;;  %v1043_v43 = vsel %vm494_vm12, %v1041_v30, %v1039_v61 }
 0x2fa   :  { %v1044_v25 = vmul.f32 %v1043_v43, %v3271_v17  ;;  %v1045_v36 = vmul.f32 %v1042_v62, %v3272_v58  ;;  %v3283_v62 = vld [vmem:[#allocation15_spill] sm:$0xff] }
 0x2fc   :  { %v1046_v52 = vadd.f32 %v1044_v25, %v1003_v19  ;;  %v1047_v59 = vadd.f32 %v1045_v36, %v1004_v15  ;;  %v1511_v19 = vld [vmem:[#allocation2] sm:$0xff]  ;;  %v1512_v15 = vld [vmem:[#allocation2 + $0x18] sm:$0xff] }
 0x300   :  { %v1084_v22 = vpop.permute.xlu1 %1083 }
 0x304   :  { %v1162_v35 = vpop.permute.xlu1 %1161 }
 0x305   :  { %v1082_v5 = vpop.permute.xlu0 %1081 }
 0x306   :  { %v1085_v55 = vsel %vm567_vm13, %v1082_v5, %v1084_v22  ;;  %v1086_v28 = vsel %vm567_vm13, %v1084_v22, %v1082_v5 }
 0x307   :  { %v1087_v7 = vmul.f32 %v1086_v28, %v3275_v10  ;;  %v1088_v41 = vmul.f32 %v1085_v55, %v3276_v18  ;;  %v1510_v28 = vld [vmem:[#allocation2 + $0x10] sm:$0xff] }
 0x309   :  { %v1089_v45 = vadd.f32 %v1087_v7, %v1046_v52  ;;  %v1090_v6 = vadd.f32 %v1088_v41, %v1047_v59  ;;  %v1513_v7 = vld [vmem:[#allocation2 + $0x8] sm:$0xff] }
 0x30a   :  { %v1160_v0 = vpop.permute.xlu0 %1159 }
 0x30b   :  { %v1163_v12 = vsel %vm696_vm14, %v1160_v0, %v1162_v35  ;;  %v1164_v32 = vsel %vm696_vm14, %v1162_v35, %v1160_v0  ;;  %v1124_v16 = vadd.f32 %v1122_v34, %v1089_v45  ;;  %v1125_v44 = vadd.f32 %v1123_v47, %v1090_v6 }
 0x30c   :  { %v1205_v11 = vpop.permute.xlu1 %1204  ;;  %v1165_v8 = vmul.f32 %v1163_v12, %v3277_v33  ;;  %v1166_v63 = vmul.f32 %v1164_v32, %v3278_v23 }
 0x30e   :  { %v1167_v9 = vadd.f32 %v1165_v8, %v1124_v16  ;;  %v1168_v26 = vadd.f32 %v1166_v63, %v1125_v44 }
 0x311   :  { %v1248_v29 = vpop.permute.xlu1 %1247 }
 0x312   :  { %v1203_v56 = vpop.permute.xlu0 %1202 }
 0x313   :  { %v1206_v21 = vsel %vm769_vm15, %v1203_v56, %v1205_v11  ;;  %v1207_v2 = vsel %vm769_vm15, %v1205_v11, %v1203_v56 }
 0x314   :  { %v1208_v50 = vmul.f32 %v1206_v21, %v3279_v54  ;;  %v1209_v13 = vmul.f32 %v1207_v2, %v3280_v48 }
 0x316   :  { %v1210_v31 = vadd.f32 %v1208_v50, %v1167_v9  ;;  %v1211_v42 = vadd.f32 %v1209_v13, %v1168_v26 }
 0x317   :  { %v1246_v46 = vpop.permute.xlu0 %1245 }
 0x318   :  { %v1249_v49 = vsel %vm842_vm0, %v1246_v46, %v1248_v29  ;;  %v1250_v39 = vsel %vm842_vm0, %v1248_v29, %v1246_v46 }
 0x319   :  { %v1251_v53 = vmul.f32 %v1249_v49, %v3281_v60  ;;  %v1252_v34 = vmul.f32 %v1250_v39, %v3282_v20 }
 0x31b   :  { %v1253_v47 = vadd.f32 %v1251_v53, %v1210_v31  ;;  %v1254_v1 = vadd.f32 %v1252_v34, %v1211_v42 }
 0x31d   :  { %v1374_v37 = vmul.f32 -1.442695, %v1253_v47  ;;  %v1375_v40 = vmul.f32 -1.442695, %v1254_v1 }
 0x31f   :  { %1501 = vpow2.f32 %v1374_v37 }
 0x320   :  { %1503 = vpow2.f32 %v1375_v40 }
 0x328   :  { %v1289_v14 = vpop.permute.xlu1 %1288 }
 0x329   :  { %v1502_v27 = vpop.eup %1501  ;;  %v1270_v58 = vpop.permute.xlu0 %1269 }
 0x32a   :  { %v1504_v57 = vpop.eup %1503  ;;  %v1261_v30 = vadd.f32 1.0, %v1502_v27 }
 0x32b   :  { %v1262_v61 = vadd.f32 1.0, %v1504_v57 }
 0x32c   :  { %1505 = vrcp.f32 %v1261_v30 }
 0x32d   :  { %1507 = vrcp.f32 %v1262_v61 }
 0x336   :  { %v1506_v22 = vpop.eup %1505 }
 0x337   :  { %v1508_v38 = vpop.eup %1507  ;;  %v1294_v43 = vrot.slane %v1506_v22, %v3283_v62  ;;  %v1275_v4 = vrot.slane %v1506_v22, %v3131_v51 }
 0x338   :  { %v1298_v17 = vrot.slane %v1508_v38, %v3283_v62  ;;  %v1279_v25 = vrot.slane %v1508_v38, %v3131_v51 }
 0x339   :  { %v1299_v36 = vadd.f32 %v1294_v43, %v1289_v14  ;;  %v1280_v5 = vadd.f32 %v1275_v4, %v1270_v58 }
 0x33a   :  { %v1300_v35 = vadd.f32 %v1298_v17, %v1289_v14  ;;  %v1281_v55 = vadd.f32 %v1279_v25, %v1270_v58 }
 0x33b   :  { %v1301_v24 = vmul.f32 %v1510_v28, %v1299_v36  ;;  %v1282_v3 = vmul.f32 %v1511_v19, %v1280_v5 }
 0x33c   :  { %v1302_v10 = vmul.f32 %v1512_v15, %v1300_v35  ;;  %v1283_v18 = vmul.f32 %v1513_v7, %v1281_v55 }
 0x33d   :  { %1304 = vst [vmem:[#allocation7 + $0x10] sm:$0xff] %v1301_v24  ;;  %1284 = vst [vmem:[#allocation7] sm:$0xff] %v1282_v3 }
 0x33e   :  { %1305 = vst [vmem:[#allocation7 + $0x18] sm:$0xff] %v1302_v10  ;;  %1285 = vst [vmem:[#allocation7 + $0x8] sm:$0xff] %v1283_v18 }
 0x33f   :  { %1559 = shalt.err (!%p1556_p3)
}
 0x340   :  { %s3284_s5 = sld [smem:[#allocation54_spill]] }
 0x346   :  { %s1560_s14 = scalar_lea.hbm %s3284_s5, 512 }
 0x347   :  { %p1561_p4 = scmp.ne.s32.totalorder %s3284_s5, %s1560_s14  ;;  %p1564_p5 = scmp.lt.u32.totalorder %s1560_s14, %s3284_s5 }
 0x349   :  { %p1566_p6 = pnand %p1564_p5, %p1561_p4 }
 0x34b   :  { %1569 = shalt.err (!%p1566_p6)
}
 0x34c   :  { %s3285_s16 = smov 256  }
 0x34d   :  { %1317 = dma.vmem_to_hbm [thread:$0]  %s1312_s9, 512, %s3284_s5, [#allocation4], %s3285_s16, %s3285_s16, %s3248_s22  }
 0x34e   :  { %1574 = dma.done.wait [#allocation4], 512  }
 0x34f   :  { %1575 = vsyncadd [#allocation4], 4294966784 }
 0x350   :  { %1321 = vsyncpa [#allocation3], 1 }
 0x351   :  { %1322 = vsyncpa [#allocation4], 1 }
 0x352   :  { %1323 = vsyncpa [#allocation5], 1 }

</bundles_post_ra>
